<compile_context>
chip_gen: v6e
topology: v6e:2x2x1
jax: 0.10.0
libtpu: 0.0.40
codegen_flags: <defaults>
</compile_context>

<pallas_src>
import functools

import jax
import jax.numpy as jnp
from jax import lax
from jax.experimental import pallas as pl
from jax.experimental.pallas import tpu as pltpu


# ----------------------------- fused per-level Pallas kernel -----------------------------

def _fused_level_kernel(*refs, h, w, cin, cout, hin, win, has_top_down):
    """lateral 1x1 conv [+ upsample add] -> 3x3+ReLU -> 3x3+Sigmoid -> gate, fused."""
    if has_top_down:
        (x_ref, li_ref, m2_ref, wl_ref, bl_ref, w1_ref, b1_ref, w2_ref, b2_ref,
         o_ref, pad_ref, col_ref) = refs
    else:
        (x_ref, wl_ref, bl_ref, w1_ref, b1_ref, w2_ref, b2_ref,
         o_ref, pad_ref, col_ref) = refs

    m = h * w

    # ---- lateral 1x1 conv: single (M, Cin) x (Cin, Cout) matmul, bias added once ----
    x = x_ref[...].reshape(m, cin).astype(wl_ref.dtype)
    inner = jnp.dot(x, wl_ref[...], preferred_element_type=jnp.float32) + bl_ref[...]

    # ---- fused bilinear upsample + top-down add: (M, hin*win) x (hin*win, Cout) matmul ----
    if has_top_down:
        last = li_ref[...].reshape(hin * win, cout)
        inner = inner + jnp.dot(m2_ref[...], last, preferred_element_type=jnp.float32)

    # ---- 3x3 conv (padding=1) as ONE K=9*Cout matmul via in-VMEM zero-pad + im2col ----
    def conv3x3(src_flat_f32, w9_ref, b_ref):
        pad_ref[...] = jnp.zeros_like(pad_ref)                       # zero halo
        pad_ref[pl.ds(1, h), pl.ds(1, w), :] = src_flat_f32.reshape(h, w, cout)
        for dy in range(3):
            for dx in range(3):
                k = dy * 3 + dx
                col_ref[:, pl.ds(k * cout, cout)] = (
                    pad_ref[pl.ds(dy, h), pl.ds(dx, w), :]
                    .reshape(m, cout).astype(col_ref.dtype))
        return jnp.dot(col_ref[...], w9_ref[...],
                       preferred_element_type=jnp.float32) + b_ref[...]

    hmid = jnp.maximum(conv3x3(inner, w1_ref, b1_ref), 0.0)
    attn = jax.nn.sigmoid(conv3x3(hmid, w2_ref, b2_ref))

    # ---- attention gating (f32 VPU); lane-dense store (Cout multiple of 128) ----
    o_ref[...] = (inner * attn).reshape(1, h, w, cout).astype(o_ref.dtype)


def fused_fpn_level(x_nhwc, params, last_inner=None, interp_mat=None):
    """One FPN level. x: (N,H,W,Cin); last_inner: (N,hin,win,Cout) or None;
    interp_mat: (H*W, hin*win) bilinear interpolation matrix (or None)."""
    n, h, w, cin = x_nhwc.shape
    cout = params["lat_w"].shape[1]
    has_top_down = last_inner is not None
    hin, win = (last_inner.shape[1], last_inner.shape[2]) if has_top_down else (1, 1)

    mxu_dtype = jnp.bfloat16  # bf16 only feeds the two big MXU matmuls; accum/VPU stay f32
    wl = params["lat_w"].astype(jnp.float32)                       # tiny K; keep f32
    w1 = params["a1_w"].reshape(9 * cout, cout).astype(mxu_dtype)  # K = 9*Cout
    w2 = params["a2_w"].reshape(9 * cout, cout).astype(mxu_dtype)
    bl = params["lat_b"].reshape(1, cout).astype(jnp.float32)
    b1 = params["a1_b"].reshape(1, cout).astype(jnp.float32)
    b2 = params["a2_b"].reshape(1, cout).astype(jnp.float32)

    operands = [x_nhwc]
    in_specs = [pl.BlockSpec((1, h, w, cin), lambda i: (i, 0, 0, 0))]
    if has_top_down:
        operands += [last_inner, interp_mat]
        in_specs += [
            pl.BlockSpec((1, hin, win, cout), lambda i: (i, 0, 0, 0)),
            pl.BlockSpec((h * w, hin * win), lambda i: (0, 0)),
        ]
    operands += [wl, bl, w1, b1, w2, b2]
    in_specs += [
        pl.BlockSpec((cin, cout), lambda i: (0, 0)),
        pl.BlockSpec((1, cout), lambda i: (0, 0)),
        pl.BlockSpec((9 * cout, cout), lambda i: (0, 0)),
        pl.BlockSpec((1, cout), lambda i: (0, 0)),
        pl.BlockSpec((9 * cout, cout), lambda i: (0, 0)),
        pl.BlockSpec((1, cout), lambda i: (0, 0)),
    ]

    kernel = functools.partial(
        _fused_level_kernel, h=h, w=w, cin=cin, cout=cout,
        hin=hin, win=win, has_top_down=has_top_down)

    return pl.pallas_call(
        kernel,
        out_shape=jax.ShapeDtypeStruct((n, h, w, cout), jnp.float32),
        grid=(n,),
        in_specs=in_specs,
        out_specs=pl.BlockSpec((1, h, w, cout), lambda i: (i, 0, 0, 0)),
        scratch_shapes=[
            pltpu.VMEM((h + 2, w + 2, cout), jnp.float32),   # zero-padded conv input
            pltpu.VMEM((h * w, 9 * cout), mxu_dtype),        # im2col patches (bf16)
        ],
        compiler_params=pltpu.CompilerParams(
            dimension_semantics=("parallel",)),
    )(*operands)


# ----------------------------- wrapper (per-level driver) -----------------------------

def _interp_matrix(in_size, out_size):
    """PyTorch F.interpolate(mode='bilinear', align_corners=False) as a dense matrix."""
    scale = in_size / out_size
    dst = jnp.arange(out_size, dtype=jnp.float32)
    src = jnp.maximum((dst + 0.5) * scale - 0.5, 0.0)
    i0 = jnp.clip(jnp.floor(src).astype(jnp.int32), 0, in_size - 1)
    i1 = jnp.clip(i0 + 1, 0, in_size - 1)
    w1 = src - i0.astype(jnp.float32)
    w0 = 1.0 - w1
    rows = jnp.arange(out_size)
    mat = jnp.zeros((out_size, in_size), jnp.float32)
    mat = mat.at[rows, i0].add(w0)
    mat = mat.at[rows, i1].add(w1)
    return mat


def _bilinear_matrix(in_h, in_w, out_h, out_w):
    # up_flat[(H*W_out + W), c] = sum_{h,w} Mh[H,h] * Mw[W,w] * last_flat[(h*w_in + w), c]
    return jnp.kron(_interp_matrix(in_h, out_h), _interp_matrix(in_w, out_w))


def init_params(key, feature_channels, out_channels):
    params = []
    for i, cin in enumerate(feature_channels):
        ks = jax.random.split(jax.random.fold_in(key, i), 6)
        params.append(dict(
            lat_w=jax.random.normal(ks[0], (cin, out_channels), jnp.float32) * 0.1,
            lat_b=jax.random.normal(ks[1], (out_channels,), jnp.float32) * 0.05,
            a1_w=jax.random.normal(ks[2], (3, 3, out_channels, out_channels),
                                   jnp.float32) * 0.05,
            a1_b=jax.random.normal(ks[3], (out_channels,), jnp.float32) * 0.05,
            a2_w=jax.random.normal(ks[4], (3, 3, out_channels, out_channels),
                                   jnp.float32) * 0.05,
            a2_b=jax.random.normal(ks[5], (out_channels,), jnp.float32) * 0.05,
        ))
    return params


def attentional_fpn_block(feature_maps_nhwc, params):
    """Pallas implementation of AttentionalFPNBlock.forward (NHWC tensors).
    Output list is in the same order as the inputs (== P[::-1] in PyTorch)."""
    num = len(feature_maps_nhwc)
    outs = [None] * num
    last_inner = None
    for idx in reversed(range(num)):
        x = feature_maps_nhwc[idx]
        if last_inner is None:
            inner = fused_fpn_level(x, params[idx])
        else:
            m2 = _bilinear_matrix(last_inner.shape[1], last_inner.shape[2],
                                  x.shape[1], x.shape[2])
            inner = fused_fpn_level(x, params[idx], last_inner, m2)
        last_inner = inner
        outs[idx] = inner
    return outs


# ----------------------------- pure-JAX reference -----------------------------

def _linear_idx_w(in_size, out_size):
    scale = in_size / out_size
    dst = jnp.arange(out_size, dtype=jnp.float32)
    src = jnp.maximum((dst + 0.5) * scale - 0.5, 0.0)
    i0 = jnp.minimum(jnp.floor(src).astype(jnp.int32), in_size - 1)
    i1 = jnp.minimum(i0 + 1, in_size - 1)
    w1 = src - i0.astype(jnp.float32)
    w0 = 1.0 - w1
    return i0, i1, w0, w1


def bilinear_resize(x_nhwc, out_h, out_w):
    hi0, hi1, hw0, hw1 = _linear_idx_w(x_nhwc.shape[1], out_h)
    wi0, wi1, ww0, ww1 = _linear_idx_w(x_nhwc.shape[2], out_w)
    xh = (x_nhwc[:, hi0] * hw0[None, :, None, None]
          + x_nhwc[:, hi1] * hw1[None, :, None, None])
    return (xh[:, :, wi0] * ww0[None, None, :, None]
            + xh[:, :, wi1] * ww1[None, None, :, None])


def _ref_conv(x, w, b, padding):
    out = lax.conv_general_dilated(
        x, w, window_strides=(1, 1), padding=padding,
        dimension_numbers=("NHWC", "HWIO", "NHWC"),
        precision=lax.Precision.HIGHEST)
    return out + b[None, None, None, :]


def reference_fpn_block(feature_maps_nhwc, params):
    num = len(feature_maps_nhwc)
    outs = [None] * num
    last_inner = None
    for idx in reversed(range(num)):
        x = feature_maps_nhwc[idx]
        p = params[idx]
        lat_w = p["lat_w"].reshape(1, 1, *p["lat_w"].shape)
        lateral = _ref_conv(x, lat_w, p["lat_b"], "VALID")
        if last_inner is None:
            inner = lateral
        else:
            inner = lateral + bilinear_resize(last_inner, lateral.shape[1],
                                              lateral.shape[2])
        hmid = jnp.maximum(_ref_conv(inner, p["a1_w"], p["a1_b"], "SAME"), 0.0)
        attn = jax.nn.sigmoid(_ref_conv(hmid, p["a2_w"], p["a2_b"], "SAME"))
        inner = inner * attn
        last_inner = inner
        outs[idx] = inner
    return outs


# ----------------------------- main -----------------------------

if __name__ == "__main__":
    key = jax.random.PRNGKey(0)
    feature_channels = (8, 16)
    out_channels = 128   # module default; multiple of 128 -> lane-dense stores

    # PyTorch-convention NCHW inputs (pyramid: finer level first, coarser second).
    shapes_nchw = [(2, 8, 16, 16), (2, 16, 8, 8)]
    feats_nchw = [
        jax.random.normal(jax.random.fold_in(key, 100 + i), s, jnp.float32)
        for i, s in enumerate(shapes_nchw)
    ]
    feats_nhwc = [jnp.transpose(f, (0, 2, 3, 1)) for f in feats_nchw]

    params = init_params(jax.random.fold_in(key, 7), feature_channels, out_channels)

    outs = attentional_fpn_block(feats_nhwc, params)
    outs = [jax.block_until_ready(o) for o in outs]

    refs = reference_fpn_block(feats_nhwc, params)
    for o, r in zip(outs, refs):
        assert o.shape == r.shape, (o.shape, r.shape)
        err = float(jnp.max(jnp.abs(o - r)))
        # bf16 MXU operands (f32 accumulation) vs. an f32 HIGHEST-precision reference.
        assert err < 3e-2, err

    print("KERNEL_OK")
</pallas_src>

<mosaic_0001>
module attributes {stable_mosaic.version = 11 : i64} {
  func.func @_fused_level_kernel(%arg0: i32, %arg1: memref<1x8x8x16xf32, #tpu.memory_space<vmem>>, %arg2: memref<16x128xf32, #tpu.memory_space<vmem>>, %arg3: memref<1x128xf32, #tpu.memory_space<vmem>>, %arg4: memref<1152x128xbf16, #tpu.memory_space<vmem>>, %arg5: memref<1x128xf32, #tpu.memory_space<vmem>>, %arg6: memref<1152x128xbf16, #tpu.memory_space<vmem>>, %arg7: memref<1x128xf32, #tpu.memory_space<vmem>>, %arg8: memref<1x8x8x128xf32, #tpu.memory_space<vmem>>, %arg9: memref<10x10x128xf32, #tpu.memory_space<vmem>>, %arg10: memref<64x1152xbf16, #tpu.memory_space<vmem>>) attributes {dimension_semantics = [#tpu.dimension_semantics<parallel>], iteration_bounds = array<i64: 2>, scalar_prefetch = 0 : i64, scratch_operands = 2 : i64, tpu.core_type = #tpu.core_type<tc>, window_params = [{transform_indices = @transform_0, window_bounds = array<i64: 1, 8, 8, 16>}, {pipeline_mode = #tpu.pipeline_mode<synchronous>, transform_indices = @transform_1, window_bounds = array<i64: 16, 128>}, {pipeline_mode = #tpu.pipeline_mode<synchronous>, transform_indices = @transform_2, window_bounds = array<i64: 1, 128>}, {pipeline_mode = #tpu.pipeline_mode<synchronous>, transform_indices = @transform_3, window_bounds = array<i64: 1152, 128>}, {pipeline_mode = #tpu.pipeline_mode<synchronous>, transform_indices = @transform_4, window_bounds = array<i64: 1, 128>}, {pipeline_mode = #tpu.pipeline_mode<synchronous>, transform_indices = @transform_5, window_bounds = array<i64: 1152, 128>}, {pipeline_mode = #tpu.pipeline_mode<synchronous>, transform_indices = @transform_6, window_bounds = array<i64: 1, 128>}, {transform_indices = @transform_7, window_bounds = array<i64: 1, 8, 8, 128>}]} {
    %c0 = arith.constant 0 : index
    %c0_0 = arith.constant 0 : index
    %c0_1 = arith.constant 0 : index
    %c0_2 = arith.constant 0 : index
    %0 = vector.load %arg1[%c0, %c0_0, %c0_1, %c0_2] : memref<1x8x8x16xf32, #tpu.memory_space<vmem>>, vector<1x8x8x16xf32>
    %1 = vector.shape_cast %0 : vector<1x8x8x16xf32> to vector<64x16xf32>
    %c0_3 = arith.constant 0 : index
    %c0_4 = arith.constant 0 : index
    %2 = vector.load %arg2[%c0_3, %c0_4] : memref<16x128xf32, #tpu.memory_space<vmem>>, vector<16x128xf32>
    %cst = arith.constant dense<0.000000e+00> : vector<64x128xf32>
    %3 = tpu.matmul %1, %2, %cst {dimension_numbers = #tpu.dot_dimension_numbers<[1], [0], [0], [1], [0, 0, 1, 1], [], []>} : vector<64x16xf32>, vector<16x128xf32>, vector<64x128xf32> -> vector<64x128xf32>
    %c0_5 = arith.constant 0 : index
    %c0_6 = arith.constant 0 : index
    %4 = vector.load %arg3[%c0_5, %c0_6] : memref<1x128xf32, #tpu.memory_space<vmem>>, vector<1x128xf32>
    %5 = vector.broadcast %4 : vector<1x128xf32> to vector<64x128xf32>
    %6 = arith.addf %3, %5 : vector<64x128xf32>
    %cst_7 = arith.constant 0.000000e+00 : f32
    %7 = vector.broadcast %cst_7 : f32 to vector<10x10x128xf32>
    %c0_8 = arith.constant 0 : index
    %c0_9 = arith.constant 0 : index
    %c0_10 = arith.constant 0 : index
    %8 = vector.load %arg9[%c0_8, %c0_9, %c0_10] : memref<10x10x128xf32, #tpu.memory_space<vmem>>, vector<10x10x128xf32>
    tpu.vector_store %arg9[%c0_8, %c0_9, %c0_10], %7 {strides = array<i32>} : memref<10x10x128xf32, #tpu.memory_space<vmem>>, vector<10x10x128xf32>,
    %9 = vector.shape_cast %6 : vector<64x128xf32> to vector<8x8x128xf32>
    %c1 = arith.constant 1 : index
    %c1_11 = arith.constant 1 : index
    %c0_12 = arith.constant 0 : index
    %10 = vector.load %arg9[%c1, %c1_11, %c0_12] : memref<10x10x128xf32, #tpu.memory_space<vmem>>, vector<8x8x128xf32>
    tpu.vector_store %arg9[%c1, %c1_11, %c0_12], %9 {strides = array<i32>} : memref<10x10x128xf32, #tpu.memory_space<vmem>>, vector<8x8x128xf32>,
    %c0_13 = arith.constant 0 : index
    %c0_14 = arith.constant 0 : index
    %c0_15 = arith.constant 0 : index
    %11 = vector.load %arg9[%c0_13, %c0_14, %c0_15] : memref<10x10x128xf32, #tpu.memory_space<vmem>>, vector<8x8x128xf32>
    %12 = vector.shape_cast %11 : vector<8x8x128xf32> to vector<64x128xf32>
    %13 = arith.truncf %12 : vector<64x128xf32> to vector<64x128xbf16>
    %c0_16 = arith.constant 0 : index
    %c0_17 = arith.constant 0 : index
    %14 = vector.load %arg10[%c0_16, %c0_17] : memref<64x1152xbf16, #tpu.memory_space<vmem>>, vector<64x128xbf16>
    tpu.vector_store %arg10[%c0_16, %c0_17], %13 {strides = array<i32>} : memref<64x1152xbf16, #tpu.memory_space<vmem>>, vector<64x128xbf16>,
    %c0_18 = arith.constant 0 : index
    %c1_19 = arith.constant 1 : index
    %c0_20 = arith.constant 0 : index
    %15 = vector.load %arg9[%c0_18, %c1_19, %c0_20] : memref<10x10x128xf32, #tpu.memory_space<vmem>>, vector<8x8x128xf32>
    %16 = vector.shape_cast %15 : vector<8x8x128xf32> to vector<64x128xf32>
    %17 = arith.truncf %16 : vector<64x128xf32> to vector<64x128xbf16>
    %c0_21 = arith.constant 0 : index
    %c128 = arith.constant 128 : index
    %18 = vector.load %arg10[%c0_21, %c128] : memref<64x1152xbf16, #tpu.memory_space<vmem>>, vector<64x128xbf16>
    tpu.vector_store %arg10[%c0_21, %c128], %17 {strides = array<i32>} : memref<64x1152xbf16, #tpu.memory_space<vmem>>, vector<64x128xbf16>,
    %c0_22 = arith.constant 0 : index
    %c2 = arith.constant 2 : index
    %c0_23 = arith.constant 0 : index
    %19 = vector.load %arg9[%c0_22, %c2, %c0_23] : memref<10x10x128xf32, #tpu.memory_space<vmem>>, vector<8x8x128xf32>
    %20 = vector.shape_cast %19 : vector<8x8x128xf32> to vector<64x128xf32>
    %21 = arith.truncf %20 : vector<64x128xf32> to vector<64x128xbf16>
    %c0_24 = arith.constant 0 : index
    %c256 = arith.constant 256 : index
    %22 = vector.load %arg10[%c0_24, %c256] : memref<64x1152xbf16, #tpu.memory_space<vmem>>, vector<64x128xbf16>
    tpu.vector_store %arg10[%c0_24, %c256], %21 {strides = array<i32>} : memref<64x1152xbf16, #tpu.memory_space<vmem>>, vector<64x128xbf16>,
    %c1_25 = arith.constant 1 : index
    %c0_26 = arith.constant 0 : index
    %c0_27 = arith.constant 0 : index
    %23 = vector.load %arg9[%c1_25, %c0_26, %c0_27] : memref<10x10x128xf32, #tpu.memory_space<vmem>>, vector<8x8x128xf32>
    %24 = vector.shape_cast %23 : vector<8x8x128xf32> to vector<64x128xf32>
    %25 = arith.truncf %24 : vector<64x128xf32> to vector<64x128xbf16>
    %c0_28 = arith.constant 0 : index
    %c384 = arith.constant 384 : index
    %26 = vector.load %arg10[%c0_28, %c384] : memref<64x1152xbf16, #tpu.memory_space<vmem>>, vector<64x128xbf16>
    tpu.vector_store %arg10[%c0_28, %c384], %25 {strides = array<i32>} : memref<64x1152xbf16, #tpu.memory_space<vmem>>, vector<64x128xbf16>,
    %c1_29 = arith.constant 1 : index
    %c1_30 = arith.constant 1 : index
    %c0_31 = arith.constant 0 : index
    %27 = vector.load %arg9[%c1_29, %c1_30, %c0_31] : memref<10x10x128xf32, #tpu.memory_space<vmem>>, vector<8x8x128xf32>
    %28 = vector.shape_cast %27 : vector<8x8x128xf32> to vector<64x128xf32>
    %29 = arith.truncf %28 : vector<64x128xf32> to vector<64x128xbf16>
    %c0_32 = arith.constant 0 : index
    %c512 = arith.constant 512 : index
    %30 = vector.load %arg10[%c0_32, %c512] : memref<64x1152xbf16, #tpu.memory_space<vmem>>, vector<64x128xbf16>
    tpu.vector_store %arg10[%c0_32, %c512], %29 {strides = array<i32>} : memref<64x1152xbf16, #tpu.memory_space<vmem>>, vector<64x128xbf16>,
    %c1_33 = arith.constant 1 : index
    %c2_34 = arith.constant 2 : index
    %c0_35 = arith.constant 0 : index
    %31 = vector.load %arg9[%c1_33, %c2_34, %c0_35] : memref<10x10x128xf32, #tpu.memory_space<vmem>>, vector<8x8x128xf32>
    %32 = vector.shape_cast %31 : vector<8x8x128xf32> to vector<64x128xf32>
    %33 = arith.truncf %32 : vector<64x128xf32> to vector<64x128xbf16>
    %c0_36 = arith.constant 0 : index
    %c640 = arith.constant 640 : index
    %34 = vector.load %arg10[%c0_36, %c640] : memref<64x1152xbf16, #tpu.memory_space<vmem>>, vector<64x128xbf16>
    tpu.vector_store %arg10[%c0_36, %c640], %33 {strides = array<i32>} : memref<64x1152xbf16, #tpu.memory_space<vmem>>, vector<64x128xbf16>,
    %c2_37 = arith.constant 2 : index
    %c0_38 = arith.constant 0 : index
    %c0_39 = arith.constant 0 : index
    %35 = vector.load %arg9[%c2_37, %c0_38, %c0_39] : memref<10x10x128xf32, #tpu.memory_space<vmem>>, vector<8x8x128xf32>
    %36 = vector.shape_cast %35 : vector<8x8x128xf32> to vector<64x128xf32>
    %37 = arith.truncf %36 : vector<64x128xf32> to vector<64x128xbf16>
    %c0_40 = arith.constant 0 : index
    %c768 = arith.constant 768 : index
    %38 = vector.load %arg10[%c0_40, %c768] : memref<64x1152xbf16, #tpu.memory_space<vmem>>, vector<64x128xbf16>
    tpu.vector_store %arg10[%c0_40, %c768], %37 {strides = array<i32>} : memref<64x1152xbf16, #tpu.memory_space<vmem>>, vector<64x128xbf16>,
    %c2_41 = arith.constant 2 : index
    %c1_42 = arith.constant 1 : index
    %c0_43 = arith.constant 0 : index
    %39 = vector.load %arg9[%c2_41, %c1_42, %c0_43] : memref<10x10x128xf32, #tpu.memory_space<vmem>>, vector<8x8x128xf32>
    %40 = vector.shape_cast %39 : vector<8x8x128xf32> to vector<64x128xf32>
    %41 = arith.truncf %40 : vector<64x128xf32> to vector<64x128xbf16>
    %c0_44 = arith.constant 0 : index
    %c896 = arith.constant 896 : index
    %42 = vector.load %arg10[%c0_44, %c896] : memref<64x1152xbf16, #tpu.memory_space<vmem>>, vector<64x128xbf16>
    tpu.vector_store %arg10[%c0_44, %c896], %41 {strides = array<i32>} : memref<64x1152xbf16, #tpu.memory_space<vmem>>, vector<64x128xbf16>,
    %c2_45 = arith.constant 2 : index
    %c2_46 = arith.constant 2 : index
    %c0_47 = arith.constant 0 : index
    %43 = vector.load %arg9[%c2_45, %c2_46, %c0_47] : memref<10x10x128xf32, #tpu.memory_space<vmem>>, vector<8x8x128xf32>
    %44 = vector.shape_cast %43 : vector<8x8x128xf32> to vector<64x128xf32>
    %45 = arith.truncf %44 : vector<64x128xf32> to vector<64x128xbf16>
    %c0_48 = arith.constant 0 : index
    %c1024 = arith.constant 1024 : index
    %46 = vector.load %arg10[%c0_48, %c1024] : memref<64x1152xbf16, #tpu.memory_space<vmem>>, vector<64x128xbf16>
    tpu.vector_store %arg10[%c0_48, %c1024], %45 {strides = array<i32>} : memref<64x1152xbf16, #tpu.memory_space<vmem>>, vector<64x128xbf16>,
    %c0_49 = arith.constant 0 : index
    %c0_50 = arith.constant 0 : index
    %47 = vector.load %arg10[%c0_49, %c0_50] : memref<64x1152xbf16, #tpu.memory_space<vmem>>, vector<64x1152xbf16>
    %c0_51 = arith.constant 0 : index
    %c0_52 = arith.constant 0 : index
    %48 = vector.load %arg4[%c0_51, %c0_52] : memref<1152x128xbf16, #tpu.memory_space<vmem>>, vector<1152x128xbf16>
    %cst_53 = arith.constant dense<0.000000e+00> : vector<64x128xf32>
    %49 = tpu.matmul %47, %48, %cst_53 {dimension_numbers = #tpu.dot_dimension_numbers<[1], [0], [0], [1], [0, 0, 1, 1], [], []>} : vector<64x1152xbf16>, vector<1152x128xbf16>, vector<64x128xf32> -> vector<64x128xf32>
    %c0_54 = arith.constant 0 : index
    %c0_55 = arith.constant 0 : index
    %50 = vector.load %arg5[%c0_54, %c0_55] : memref<1x128xf32, #tpu.memory_space<vmem>>, vector<1x128xf32>
    %51 = vector.broadcast %50 : vector<1x128xf32> to vector<64x128xf32>
    %52 = arith.addf %49, %51 : vector<64x128xf32>
    %cst_56 = arith.constant 0.000000e+00 : f32
    %53 = vector.broadcast %cst_56 : f32 to vector<64x128xf32>
    %54 = arith.maximumf %52, %53 : vector<64x128xf32>
    %cst_57 = arith.constant 0.000000e+00 : f32
    %55 = vector.broadcast %cst_57 : f32 to vector<10x10x128xf32>
    %c0_58 = arith.constant 0 : index
    %c0_59 = arith.constant 0 : index
    %c0_60 = arith.constant 0 : index
    %56 = vector.load %arg9[%c0_58, %c0_59, %c0_60] : memref<10x10x128xf32, #tpu.memory_space<vmem>>, vector<10x10x128xf32>
    tpu.vector_store %arg9[%c0_58, %c0_59, %c0_60], %55 {strides = array<i32>} : memref<10x10x128xf32, #tpu.memory_space<vmem>>, vector<10x10x128xf32>,
    %57 = vector.shape_cast %54 : vector<64x128xf32> to vector<8x8x128xf32>
    %c1_61 = arith.constant 1 : index
    %c1_62 = arith.constant 1 : index
    %c0_63 = arith.constant 0 : index
    %58 = vector.load %arg9[%c1_61, %c1_62, %c0_63] : memref<10x10x128xf32, #tpu.memory_space<vmem>>, vector<8x8x128xf32>
    tpu.vector_store %arg9[%c1_61, %c1_62, %c0_63], %57 {strides = array<i32>} : memref<10x10x128xf32, #tpu.memory_space<vmem>>, vector<8x8x128xf32>,
    %c0_64 = arith.constant 0 : index
    %c0_65 = arith.constant 0 : index
    %c0_66 = arith.constant 0 : index
    %59 = vector.load %arg9[%c0_64, %c0_65, %c0_66] : memref<10x10x128xf32, #tpu.memory_space<vmem>>, vector<8x8x128xf32>
    %60 = vector.shape_cast %59 : vector<8x8x128xf32> to vector<64x128xf32>
    %61 = arith.truncf %60 : vector<64x128xf32> to vector<64x128xbf16>
    %c0_67 = arith.constant 0 : index
    %c0_68 = arith.constant 0 : index
    %62 = vector.load %arg10[%c0_67, %c0_68] : memref<64x1152xbf16, #tpu.memory_space<vmem>>, vector<64x128xbf16>
    tpu.vector_store %arg10[%c0_67, %c0_68], %61 {strides = array<i32>} : memref<64x1152xbf16, #tpu.memory_space<vmem>>, vector<64x128xbf16>,
    %c0_69 = arith.constant 0 : index
    %c1_70 = arith.constant 1 : index
    %c0_71 = arith.constant 0 : index
    %63 = vector.load %arg9[%c0_69, %c1_70, %c0_71] : memref<10x10x128xf32, #tpu.memory_space<vmem>>, vector<8x8x128xf32>
    %64 = vector.shape_cast %63 : vector<8x8x128xf32> to vector<64x128xf32>
    %65 = arith.truncf %64 : vector<64x128xf32> to vector<64x128xbf16>
    %c0_72 = arith.constant 0 : index
    %c128_73 = arith.constant 128 : index
    %66 = vector.load %arg10[%c0_72, %c128_73] : memref<64x1152xbf16, #tpu.memory_space<vmem>>, vector<64x128xbf16>
    tpu.vector_store %arg10[%c0_72, %c128_73], %65 {strides = array<i32>} : memref<64x1152xbf16, #tpu.memory_space<vmem>>, vector<64x128xbf16>,
    %c0_74 = arith.constant 0 : index
    %c2_75 = arith.constant 2 : index
    %c0_76 = arith.constant 0 : index
    %67 = vector.load %arg9[%c0_74, %c2_75, %c0_76] : memref<10x10x128xf32, #tpu.memory_space<vmem>>, vector<8x8x128xf32>
    %68 = vector.shape_cast %67 : vector<8x8x128xf32> to vector<64x128xf32>
    %69 = arith.truncf %68 : vector<64x128xf32> to vector<64x128xbf16>
    %c0_77 = arith.constant 0 : index
    %c256_78 = arith.constant 256 : index
    %70 = vector.load %arg10[%c0_77, %c256_78] : memref<64x1152xbf16, #tpu.memory_space<vmem>>, vector<64x128xbf16>
    tpu.vector_store %arg10[%c0_77, %c256_78], %69 {strides = array<i32>} : memref<64x1152xbf16, #tpu.memory_space<vmem>>, vector<64x128xbf16>,
    %c1_79 = arith.constant 1 : index
    %c0_80 = arith.constant 0 : index
    %c0_81 = arith.constant 0 : index
    %71 = vector.load %arg9[%c1_79, %c0_80, %c0_81] : memref<10x10x128xf32, #tpu.memory_space<vmem>>, vector<8x8x128xf32>
    %72 = vector.shape_cast %71 : vector<8x8x128xf32> to vector<64x128xf32>
    %73 = arith.truncf %72 : vector<64x128xf32> to vector<64x128xbf16>
    %c0_82 = arith.constant 0 : index
    %c384_83 = arith.constant 384 : index
    %74 = vector.load %arg10[%c0_82, %c384_83] : memref<64x1152xbf16, #tpu.memory_space<vmem>>, vector<64x128xbf16>
    tpu.vector_store %arg10[%c0_82, %c384_83], %73 {strides = array<i32>} : memref<64x1152xbf16, #tpu.memory_space<vmem>>, vector<64x128xbf16>,
    %c1_84 = arith.constant 1 : index
    %c1_85 = arith.constant 1 : index
    %c0_86 = arith.constant 0 : index
    %75 = vector.load %arg9[%c1_84, %c1_85, %c0_86] : memref<10x10x128xf32, #tpu.memory_space<vmem>>, vector<8x8x128xf32>
    %76 = vector.shape_cast %75 : vector<8x8x128xf32> to vector<64x128xf32>
    %77 = arith.truncf %76 : vector<64x128xf32> to vector<64x128xbf16>
    %c0_87 = arith.constant 0 : index
    %c512_88 = arith.constant 512 : index
    %78 = vector.load %arg10[%c0_87, %c512_88] : memref<64x1152xbf16, #tpu.memory_space<vmem>>, vector<64x128xbf16>
    tpu.vector_store %arg10[%c0_87, %c512_88], %77 {strides = array<i32>} : memref<64x1152xbf16, #tpu.memory_space<vmem>>, vector<64x128xbf16>,
    %c1_89 = arith.constant 1 : index
    %c2_90 = arith.constant 2 : index
    %c0_91 = arith.constant 0 : index
    %79 = vector.load %arg9[%c1_89, %c2_90, %c0_91] : memref<10x10x128xf32, #tpu.memory_space<vmem>>, vector<8x8x128xf32>
    %80 = vector.shape_cast %79 : vector<8x8x128xf32> to vector<64x128xf32>
    %81 = arith.truncf %80 : vector<64x128xf32> to vector<64x128xbf16>
    %c0_92 = arith.constant 0 : index
    %c640_93 = arith.constant 640 : index
    %82 = vector.load %arg10[%c0_92, %c640_93] : memref<64x1152xbf16, #tpu.memory_space<vmem>>, vector<64x128xbf16>
    tpu.vector_store %arg10[%c0_92, %c640_93], %81 {strides = array<i32>} : memref<64x1152xbf16, #tpu.memory_space<vmem>>, vector<64x128xbf16>,
    %c2_94 = arith.constant 2 : index
    %c0_95 = arith.constant 0 : index
    %c0_96 = arith.constant 0 : index
    %83 = vector.load %arg9[%c2_94, %c0_95, %c0_96] : memref<10x10x128xf32, #tpu.memory_space<vmem>>, vector<8x8x128xf32>
    %84 = vector.shape_cast %83 : vector<8x8x128xf32> to vector<64x128xf32>
    %85 = arith.truncf %84 : vector<64x128xf32> to vector<64x128xbf16>
    %c0_97 = arith.constant 0 : index
    %c768_98 = arith.constant 768 : index
    %86 = vector.load %arg10[%c0_97, %c768_98] : memref<64x1152xbf16, #tpu.memory_space<vmem>>, vector<64x128xbf16>
    tpu.vector_store %arg10[%c0_97, %c768_98], %85 {strides = array<i32>} : memref<64x1152xbf16, #tpu.memory_space<vmem>>, vector<64x128xbf16>,
    %c2_99 = arith.constant 2 : index
    %c1_100 = arith.constant 1 : index
    %c0_101 = arith.constant 0 : index
    %87 = vector.load %arg9[%c2_99, %c1_100, %c0_101] : memref<10x10x128xf32, #tpu.memory_space<vmem>>, vector<8x8x128xf32>
    %88 = vector.shape_cast %87 : vector<8x8x128xf32> to vector<64x128xf32>
    %89 = arith.truncf %88 : vector<64x128xf32> to vector<64x128xbf16>
    %c0_102 = arith.constant 0 : index
    %c896_103 = arith.constant 896 : index
    %90 = vector.load %arg10[%c0_102, %c896_103] : memref<64x1152xbf16, #tpu.memory_space<vmem>>, vector<64x128xbf16>
    tpu.vector_store %arg10[%c0_102, %c896_103], %89 {strides = array<i32>} : memref<64x1152xbf16, #tpu.memory_space<vmem>>, vector<64x128xbf16>,
    %c2_104 = arith.constant 2 : index
    %c2_105 = arith.constant 2 : index
    %c0_106 = arith.constant 0 : index
    %91 = vector.load %arg9[%c2_104, %c2_105, %c0_106] : memref<10x10x128xf32, #tpu.memory_space<vmem>>, vector<8x8x128xf32>
    %92 = vector.shape_cast %91 : vector<8x8x128xf32> to vector<64x128xf32>
    %93 = arith.truncf %92 : vector<64x128xf32> to vector<64x128xbf16>
    %c0_107 = arith.constant 0 : index
    %c1024_108 = arith.constant 1024 : index
    %94 = vector.load %arg10[%c0_107, %c1024_108] : memref<64x1152xbf16, #tpu.memory_space<vmem>>, vector<64x128xbf16>
    tpu.vector_store %arg10[%c0_107, %c1024_108], %93 {strides = array<i32>} : memref<64x1152xbf16, #tpu.memory_space<vmem>>, vector<64x128xbf16>,
    %c0_109 = arith.constant 0 : index
    %c0_110 = arith.constant 0 : index
    %95 = vector.load %arg10[%c0_109, %c0_110] : memref<64x1152xbf16, #tpu.memory_space<vmem>>, vector<64x1152xbf16>
    %c0_111 = arith.constant 0 : index
    %c0_112 = arith.constant 0 : index
    %96 = vector.load %arg6[%c0_111, %c0_112] : memref<1152x128xbf16, #tpu.memory_space<vmem>>, vector<1152x128xbf16>
    %cst_113 = arith.constant dense<0.000000e+00> : vector<64x128xf32>
    %97 = tpu.matmul %95, %96, %cst_113 {dimension_numbers = #tpu.dot_dimension_numbers<[1], [0], [0], [1], [0, 0, 1, 1], [], []>} : vector<64x1152xbf16>, vector<1152x128xbf16>, vector<64x128xf32> -> vector<64x128xf32>
    %c0_114 = arith.constant 0 : index
    %c0_115 = arith.constant 0 : index
    %98 = vector.load %arg7[%c0_114, %c0_115] : memref<1x128xf32, #tpu.memory_space<vmem>>, vector<1x128xf32>
    %99 = vector.broadcast %98 : vector<1x128xf32> to vector<64x128xf32>
    %100 = arith.addf %97, %99 : vector<64x128xf32>
    %101 = arith.negf %100 : vector<64x128xf32>
    %102 = math.exp %101 : vector<64x128xf32>
    %cst_116 = arith.constant 1.000000e+00 : f32
    %103 = vector.broadcast %cst_116 : f32 to vector<64x128xf32>
    %104 = arith.addf %103, %102 : vector<64x128xf32>
    %105 = arith.divf %103, %104 : vector<64x128xf32>
    %106 = arith.mulf %6, %105 : vector<64x128xf32>
    %107 = vector.shape_cast %106 : vector<64x128xf32> to vector<1x8x8x128xf32>
    %c0_117 = arith.constant 0 : index
    %c0_118 = arith.constant 0 : index
    %c0_119 = arith.constant 0 : index
    %c0_120 = arith.constant 0 : index
    %108 = vector.load %arg8[%c0_117, %c0_118, %c0_119, %c0_120] : memref<1x8x8x128xf32, #tpu.memory_space<vmem>>, vector<1x8x8x128xf32>
    tpu.vector_store %arg8[%c0_117, %c0_118, %c0_119, %c0_120], %107 {strides = array<i32>} : memref<1x8x8x128xf32, #tpu.memory_space<vmem>>, vector<1x8x8x128xf32>,
    return
  }
  func.func @transform_0(%arg0: i32) -> (i32, i32, i32, i32) {
    %c0_i32 = arith.constant 0 : i32
    %c0_i32_0 = arith.constant 0 : i32
    %c0_i32_1 = arith.constant 0 : i32
    %c0_i32_2 = arith.constant 0 : i32
    return %arg0, %c0_i32, %c0_i32_0, %c0_i32_1 : i32, i32, i32, i32
  }
  func.func @transform_1(%arg0: i32) -> (i32, i32) {
    %c0_i32 = arith.constant 0 : i32
    %c0_i32_0 = arith.constant 0 : i32
    %c0_i32_1 = arith.constant 0 : i32
    return %c0_i32, %c0_i32_0 : i32, i32
  }
  func.func @transform_2(%arg0: i32) -> (i32, i32) {
    %c0_i32 = arith.constant 0 : i32
    %c0_i32_0 = arith.constant 0 : i32
    %c0_i32_1 = arith.constant 0 : i32
    return %c0_i32, %c0_i32_0 : i32, i32
  }
  func.func @transform_3(%arg0: i32) -> (i32, i32) {
    %c0_i32 = arith.constant 0 : i32
    %c0_i32_0 = arith.constant 0 : i32
    %c0_i32_1 = arith.constant 0 : i32
    return %c0_i32, %c0_i32_0 : i32, i32
  }
  func.func @transform_4(%arg0: i32) -> (i32, i32) {
    %c0_i32 = arith.constant 0 : i32
    %c0_i32_0 = arith.constant 0 : i32
    %c0_i32_1 = arith.constant 0 : i32
    return %c0_i32, %c0_i32_0 : i32, i32
  }
  func.func @transform_5(%arg0: i32) -> (i32, i32) {
    %c0_i32 = arith.constant 0 : i32
    %c0_i32_0 = arith.constant 0 : i32
    %c0_i32_1 = arith.constant 0 : i32
    return %c0_i32, %c0_i32_0 : i32, i32
  }
  func.func @transform_6(%arg0: i32) -> (i32, i32) {
    %c0_i32 = arith.constant 0 : i32
    %c0_i32_0 = arith.constant 0 : i32
    %c0_i32_1 = arith.constant 0 : i32
    return %c0_i32, %c0_i32_0 : i32, i32
  }
  func.func @transform_7(%arg0: i32) -> (i32, i32, i32, i32) {
    %c0_i32 = arith.constant 0 : i32
    %c0_i32_0 = arith.constant 0 : i32
    %c0_i32_1 = arith.constant 0 : i32
    %c0_i32_2 = arith.constant 0 : i32
    return %arg0, %c0_i32, %c0_i32_0, %c0_i32_1 : i32, i32, i32, i32
  }
}

</mosaic_0001>

<bundles_post_ra>
// kernel: tpu_custom_call.1
= control target key start
LH: loop header
LB: loop body
LE: loop exit
PB: predicated region body
PF: predicated region fallthrough
CT: control target
= control target key end

     0   :  { %s5855_s0 = inlined_call_operand.hbm [shape: f32[2,8,8,16], index: 0, kind: input, shape index: {}]   ;;  %s5856_s1 = inlined_call_operand.hbm [shape: f32[16,128], index: 1, kind: input, shape index: {}]   ;;  %s5857_s2 = inlined_call_operand.vmem [shape: f32[1,128], index: 2, kind: input, shape index: {}]   ;;  %s5858_s3 = inlined_call_operand.hbm [shape: bf16[1152,128], index: 3, kind: input, shape index: {}]   ;;  %s5859_s4 = inlined_call_operand.vmem [shape: f32[1,128], index: 4, kind: input, shape index: {}]   ;;  %s5860_s5 = inlined_call_operand.hbm [shape: bf16[1152,128], index: 5, kind: input, shape index: {}]   ;;  %s5861_s6 = inlined_call_operand.vmem [shape: f32[1,128], index: 6, kind: input, shape index: {}]   ;;  %s5862_s7 = inlined_call_operand.hbm [shape: f32[2,8,8,128], index: 7, kind: output, shape index: {}]  }
   0x1   :  { %5877 = sst [smem:[#allocation31_spill]] %s5856_s1 }
   0x2   :  { %12 = vsyncpa [#allocation5], 0 }
   0x3   :  { %14 = vsyncpa [#allocation5 + $0x1], 0 }
   0x4   :  { %15 = vsyncpa [#allocation8], 0 }
   0x5   :  { %16 = vsyncpa [#allocation11], 0 }
   0x6   :  { %17 = vsyncpa [#allocation6], 0 }
   0x7   :  { %19 = vsyncpa [#allocation6 + $0x1], 0  ;;  %s5411_s24 = smov 0   ;;  %s5413_s25 = smov 0  }
   0x8   :  { %s5415_s26 = smov 0   ;;  %s5417_s27 = smov 0  }
   0x9 LB: > { %s5432_s28 = sadd.s32 4294967295, %s5356_s27   ;;  %s3863_s29 = sadd.s32 4294967294, %s5356_s27   ;;  %s5356_s27 = sphi %s5417_s27, %s5937_s27   ;;  %s5352_s26 = sphi %s5415_s26, %s5936_s26   ;;  %s5348_s25 = sphi %s5413_s25, %s5935_s25   ;;  %s5344_s24 = sphi %s5411_s24, %s5934_s24  }
   0xa   : > { %p45_p0 = scmp.ne.s32.totalorder %s5348_s25, %s5344_s24  ;;  %p5864_p1 = scmp.eq.s32.totalorder %s5432_s28, 0 }
   0xb   : > { %p195_p2 = scmp.eq.s32.totalorder %s5432_s28, 1  ;;  %p201_p3 = scmp.eq.s32.totalorder %s3863_s29, 1 }
   0xc   : > { %p5441_p4 = por %p5864_p1, %p45_p0  ;;  %p3864_p5 = scmp.ge.s32.totalorder %s5356_s27, 1 }
   0xd   : > { %p5446_p6 = por %p201_p3, %p45_p0  ;;  %p208_p7 = scmp.lt.s32.totalorder %s5356_s27, 3 }
   0xe   : > { %s5878_s30 = scalar_select %p5441_p4, 1, 0 }
   0xf   : > { %s5879_s8 = scalar_select %p5446_p6, 1, 0 }
  0x10   : > { %p5451_p8 = pnand %p3864_p5, %p208_p7  ;;  %s5358_s10 = smov [#allocation7]  }
  0x11   : > { %s220_s11 = sshll.u32 %s5358_s10, 4  ;;  %s5359_s13 = smov [#allocation9]   ;;  %s221_s11 = int_to_ptr.vmem [resolvable:$true] %s220_s11 }
  0x12   : > { %s5880_s9 = scalar_select %p5451_p8, 1, 0 }
  0x13   : > { %p4842_p9 = pneg %p5451_p8  ;;  %s236_s14 = sshll.u32 %s5359_s13, 4  ;;  %s237_s14 = int_to_ptr.vmem [resolvable:$true] %s236_s14 }
  0x14   : > { %s5189_s15 = scalar_lea.vmem %s221_s11, 256  ;;  %p5197_p5 = scmp.lt.s32.totalorder %s221_s11, %s221_s11 }
  0x15   : > { %p5460_p11 = pnand %p4842_p9, %p5864_p1  ;;  %p5190_p13 = scmp.ne.s32.totalorder %s221_s11, %s5189_s15 }
  0x16   : > { %p5198_p7 = scmp.lt.s32.totalorder %s5189_s15, %s5189_s15 }
  0x17   : > { %p5180_p12 = pneg %p5460_p11 }
  0x18   : > { %p5199_p10 = por %p5198_p7, %p5197_p5 }
  0x19   : > { %p5192_p0 = pnand %p5190_p13, %p5180_p12 }
  0x1b   : > { %p5193_p3 = pneg %p5192_p0 }
  0x1d   : > { %p5200_p9 = pnand %p5199_p10, %p5193_p3 }
  0x1f   : > { %5203 = shalt.err (!%p5200_p9)
}
  0x20   : > { %s5863_s16 = smov 128   ;;  %s5865_s17 = smov 8  }
  0x21   : > { %s5882_s1 = sld [smem:[#allocation31_spill]]  ;;  %s5215_s20 = scalar_lea.vmem %s237_s14, 9216 }
  0x22   : > { %p5216_p13 = scmp.ne.s32.totalorder %s237_s14, %s5215_s20  ;;  %p5223_p10 = scmp.lt.s32.totalorder %s237_s14, %s237_s14 }
  0x23   : > { %p5224_p3 = scmp.lt.s32.totalorder %s5215_s20, %s5215_s20 }
  0x24   : > { %p5218_p0 = pnand %p5216_p13, %p5180_p12 }
  0x25   : > { %p5225_p7 = por %p5224_p3, %p5223_p10 }
  0x26   : > { %p5219_p5 = pneg %p5218_p0 }
  0x27   : > { %4845 = dma.hbm_to_vmem [thread:$0]  (!%p5460_p11), %s5882_s1, 256, %s221_s11, [#allocation8], %s5863_s16, %s5863_s16, %s5865_s17  }
  0x28   : > { %p5226_p9 = pnand %p5225_p7, %p5219_p5 }
  0x2a   : > { %5229 = shalt.err (!%p5226_p9)
}
  0x2b   : > { %s5362_s21 = smov 64   ;;  %s5363_s22 = smov 4  }
  0x2c   : > { %4848 = dma.hbm_to_vmem [thread:$0]  (!%p5460_p11), %s5858_s3, 9216, %s237_s14, [#allocation8], %s5362_s21, %s5362_s21, %s5363_s22  }
  0x2d   : > { %s5364_s10 = smov [#allocation10]   ;;  %s5486_s13 = sadd.s32 1, %s5356_s27  }
  0x2e   : > { %s252_s11 = sshll.u32 %s5364_s10, 4  ;;  %s253_s11 = int_to_ptr.vmem [resolvable:$true] %s252_s11 }
  0x2f   : > { %s5241_s15 = scalar_lea.vmem %s253_s11, 9216  ;;  %p5249_p10 = scmp.lt.s32.totalorder %s253_s11, %s253_s11 }
  0x30   : > { %p5242_p13 = scmp.ne.s32.totalorder %s253_s11, %s5241_s15  ;;  %p5250_p3 = scmp.lt.s32.totalorder %s5241_s15, %s5241_s15 }
  0x32   : > { %p5244_p0 = pnand %p5242_p13, %p5180_p12  ;;  %p5251_p7 = por %p5250_p3, %p5249_p10 }
  0x34   : > { %p5245_p5 = pneg %p5244_p0 }
  0x36   : > { %p5252_p9 = pnand %p5251_p7, %p5245_p5 }
  0x38   : > { %5255 = shalt.err (!%p5252_p9)
}
  0x39   : > { %4851 = dma.hbm_to_vmem [thread:$0]  (!%p5460_p11), %s5860_s5, 9216, %s253_s11, [#allocation11], %s5362_s21, %s5362_s21, %s5363_s22  }
  0x3a   : > { %s29_s19 = ssub.s32 %s5356_s27, %s5486_s13  ;;  %s32_s20 = sadd.s32 1, %s5352_s26 }
  0x3b   : > { %p30_p12 = scmp.eq.s32.totalorder %s29_s19, 0  ;;  %p39_p13 = scmp.ne.s32.totalorder %s5352_s26, %s5348_s25 }
  0x3c   : > { %p40_p0 = scmp.eq.s32.totalorder %s5356_s27, 0  ;;  %p4863_p5 = scmp.lt.s32.totalorder %s5356_s27, 2 }
  0x3d   : > { %s5504_s12 = scalar_select %p30_p12, %s5352_s26, %s32_s20  }
  0x3e   : > { %p41_p10 = por %p40_p0, %p39_p13  ;;  %p5508_p3 = por %p195_p2, %p39_p13 }
  0x3f   : > { %s269_s29 = sand.u32 1, %s5352_s26   ;;  %s4262_s10 = sshll.u32 %s5356_s27, 10 }
  0x40   : > { %s5883_s23 = scalar_select %p5508_p3, 1, 0 }
  0x41   : > { %s3869_s15 = sshll.u32 %s269_s29, 6  ;;  %s5517_s21 = scalar_lea.hbm %s5855_s0, %s4262_s10 }
  0x42   : > { %s273_s22 = scalar_lea.vmem [#allocation4], %s3869_s15  ;;  %p5519_p11 = pnand %p4863_p5, %p41_p10 }
  0x43   : > { %s280_s11 = sshll.u32 %s273_s22, 4  ;;  %s5525_s20 = scalar_lea.sflag [#allocation5], %s269_s29  ;;  %s5523_s11 = int_to_ptr.vmem [resolvable:$true] %s280_s11 }
  0x44   : > { %s5256_s16 = scalar_lea.hbm %s5517_s21, 1024  ;;  %p5258_p7 = pneg %p5519_p11 }
  0x45   : > { %p5257_p2 = scmp.ne.s32.totalorder %s5517_s21, %s5256_s16  ;;  %s5261_s15 = scalar_lea.hbm %s5855_s0, 2048 }
  0x46   : > { %p5262_p13 = scmp.lt.s32.totalorder %s5517_s21, %s5855_s0  ;;  %p5263_p0 = scmp.lt.s32.totalorder %s5261_s15, %s5256_s16 }
  0x47   : > { %p5259_p9 = pnand %p5258_p7, %p5257_p2 }
  0x48   : > { %p5264_p5 = por %p5263_p0, %p5262_p13 }
  0x49   : > { %p5260_p12 = pneg %p5259_p9 }
  0x4b   : > { %p5265_p10 = pnand %p5264_p5, %p5260_p12 }
  0x4d   : > { %5268 = shalt.err (!%p5265_p10)
}
  0x4e   : > { %s5269_s29 = scalar_lea.vmem %s5523_s11, 1024  ;;  %s5365_s17 = smov [#allocation4]  }
  0x4f   : > { %p5270_p1 = scmp.ne.s32.totalorder %s5523_s11, %s5269_s29  ;;  %s5274_s1 = sshll.u32 %s5365_s17, 4  ;;  %s5275_s1 = int_to_ptr.vmem [resolvable:$false] %s5274_s1 }
  0x50   : > { %s5276_s10 = scalar_lea.vmem %s5275_s1, 2048  ;;  %p5277_p9 = scmp.lt.s32.totalorder %s5523_s11, %s5275_s1 }
  0x51   : > { %p5272_p6 = pnand %p5270_p1, %p5258_p7  ;;  %p5278_p3 = scmp.lt.s32.totalorder %s5276_s10, %s5269_s29 }
  0x53   : > { %p5273_p2 = pneg %p5272_p6  ;;  %p5279_p4 = por %p5278_p3, %p5277_p9 }
  0x55   : > { %p5280_p8 = pnand %p5279_p4, %p5273_p2 }
  0x57   : > { %5283 = shalt.err (!%p5280_p8)
}
  0x58   : > { %s5885_s16 = smov 8   ;;  %s5886_s18 = smov 128  }
  0x59   : > { %4855 = dma.hbm_to_vmem [thread:$0]  (!%p5519_p11), %s5517_s21, 1024, %s5523_s11, %s5525_s20, %s5886_s18, %s5886_s18, %s5885_s16  }
  0x5a   : > { %p5887_p1 = scmp.ne.s32.totalorder %s5880_s9, 0 }
  0x5c   : > { %292 = sbr.rel (%p5887_p1) target bundleno = 951 (0x3b7), region = 48 }
  0x61   : > { %s5552_s17 = sand.u32 1, %s5348_s25   ;;  %p5888_p4 = scmp.ne.s32.totalorder %s5878_s30, 0 }
  0x62   : > { %s3873_s1 = sshll.u32 %s5552_s17, 6  ;;  %s295_s15 = scalar_lea.sflag [#allocation5], %s5552_s17 }
  0x63   : > { %s5558_s19 = scalar_lea.vmem [#allocation4], %s3873_s1 }
  0x64   : > { %5327 = dma.done.wait (%p5888_p4), %s295_s15, 1024  }
  0x65   : > { %5329 = vsyncadd (%p5888_p4), %s295_s15, 4294966272  ;;  %p5889_p6 = scmp.eq.s32.totalorder %s5432_s28, 0 }
  0x67   : > { %5331 = dma.done.wait (%p5889_p6), [#allocation8], 9472   ;;  %p5890_p8 = pmov %p5889_p6 }
  0x68   : > { %p5891_p3 = pmov %p5889_p6 }
  0x69   : > { %5333 = vsyncadd (%p5890_p8), [#allocation8], 4294957824 }
  0x6a   : > { %5335 = dma.done.wait (%p5891_p3), [#allocation11], 9216   ;;  %p5892_p11 = pmov %p5891_p3 }
  0x6b   : > { %vm359_vm0 = vcmask 130048   ;;  %v351_v0 = vld [vmem:[#allocation7 + $0x8] sm:$0xff]  ;;  %v350_v1 = vld [vmem:[#allocation7] sm:$0xff]  ;;  %v344_v4 = vld [vmem:[%s5558_s19 + $0x10] sm:$0xff]  ;;  %v5366_v22 = vmov 0.0   ;;  %v5367_v41 = vmov 0.0|0.0  }
  0x6c   : > { %5337 = vsyncadd (%p5892_p11), [#allocation11], 4294958080  ;;  %v342_v2 = vld [vmem:[%s5558_s19] sm:$0xff]  ;;  %4762 = vmatprep.subr.mxu0 %v351_v0  ;;  %v343_v3 = vld [vmem:[%s5558_s19 + $0x8] sm:$0xff]  ;;  %493 = vst [vmem:[#allocation2 + $0x20] sm:$0xff] %v5366_v22  ;;  %s340_s22 = scalar_lea.vmem [#allocation12], %s3873_s1 }
  0x6d   : > { %4766 = vmatprep.mubr.msk.f32.mxu0 %vm359_vm0, %v342_v2  ;;  %4763 = vmatpush3.msra.mxu0 %v351_v0  ;;  %v345_v5 = vld [vmem:[%s5558_s19 + $0x18] sm:$0xff]  ;;  %v4910_v6 = vld [vmem:[#allocation9 + $0x78] sm:$0xff]   ;;  %v346_v7 = vld [vmem:[%s5558_s19 + $0x20] sm:$0xff]  ;;  %494 = vst [vmem:[#allocation2 + $0x28] sm:$0x3] %v5366_v22  ;;  %s4407_s29 = sshll.u32 %s5432_s28, 10 }
  0x6e   : > { %4764 = vmatprep.subr.mxu0 %v350_v1  ;;  %v4911_v8 = vld [vmem:[#allocation9 + $0x38] sm:$0xff]   ;;  %4418 = vmatprep.subr.bf16.mxu1 %v4910_v6  ;;  %v4914_v12 = vld [vmem:[#allocation9 + $0x70] sm:$0xff]   ;;  %v348_v13 = vld [vmem:[%s5558_s19 + $0x30] sm:$0xff]  ;;  %489 = vst [vmem:[#allocation2] sm:$0xff] %v5366_v22  ;;  %s3761_s10 = sshll.u32 %s340_s22, 4  ;;  %s5809_s1 = scalar_lea.hbm %s5862_s7, %s4407_s29  ;;  %s5811_s10 = int_to_ptr.vmem [resolvable:$true] %s3761_s10 }
  0x6f   : > { %4765 = vmatpush3.msra.mxu0 %v350_v1  ;;  %v4912_v9 = vld [vmem:[#allocation9 + $0xf8] sm:$0xff]   ;;  %4419 = vmatpush3.bf16.msra.mxu1 %v4911_v8  ;;  %v4915_v14 = vld [vmem:[#allocation9 + $0x30] sm:$0xff]   ;;  %v349_v17 = vld [vmem:[%s5558_s19 + $0x38] sm:$0xff]  ;;  %490 = vst [vmem:[#allocation2 + $0x8] sm:$0x3] %v5366_v22  ;;  %s3748_s28 = scalar_lea.sflag [#allocation6], %s5552_s17 }
  0x70   : > { %4767 = vmatmul.mubr.msk.f32.vlgmr.msra.gmra.mxu0 %vm359_vm0, %v343_v3  ;;  %v4913_v10 = vld [vmem:[#allocation9 + $0xb8] sm:$0xff]   ;;  %4458 = vmatprep.subr.bf16.mxu0 %v4912_v9  ;;  %v4916_v15 = vld [vmem:[#allocation9 + $0xf0] sm:$0xff]   ;;  %v4918_v18 = vld [vmem:[#allocation9 + $0x68] sm:$0xff]   ;;  %491 = vst [vmem:[#allocation2 + $0x10] sm:$0xff] %v5366_v22  ;;  %s5284_s15 = scalar_lea.vmem %s5811_s10, 1024  ;;  %p5931_p12 = scmp.ne.s32.totalorder %s5883_s23, 0 }
  0x71   : > { %4769 = vmatprep.mubr.msk.f32.mxu0 %vm359_vm0, %v344_v4  ;;  %v347_v11 = vld [vmem:[%s5558_s19 + $0x28] sm:$0xff]  ;;  %4459 = vmatpush3.bf16.msra.mxu0 %v4913_v10  ;;  %v4917_v16 = vld [vmem:[#allocation9 + $0xb0] sm:$0xff]   ;;  %v4920_v19 = vld [vmem:[#allocation9 + $0xe8] sm:$0xff]   ;;  %492 = vst [vmem:[#allocation2 + $0x18] sm:$0x3] %v5366_v22  ;;  %p5285_p7 = scmp.ne.s32.totalorder %s5811_s10, %s5284_s15  ;;  %s5368_s19 = smov [#allocation12]  }
  0x72   : > { %4420 = vmatprep.subr.bf16.mxu1 %v4914_v12  ;;  %4460 = vmatprep.subr.bf16.mxu0 %v4916_v15  ;;  %v4919_v20 = vld [vmem:[#allocation9 + $0x28] sm:$0xff]   ;;  %495 = vst [vmem:[#allocation2 + $0x30] sm:$0xff] %v5366_v22  ;;  %496 = vst [vmem:[#allocation2 + $0x38] sm:$0x3] %v5366_v22  ;;  %v4922_v23 = vld [vmem:[#allocation9 + $0x60] sm:$0xff]   ;;  %s5288_s30 = sshll.u32 %s5368_s19, 4  ;;  %s5289_s30 = int_to_ptr.vmem [resolvable:$false] %s5288_s30 }
  0x73   : > { %4421 = vmatpush3.bf16.msra.mxu1 %v4915_v14  ;;  %v4921_v21 = vld [vmem:[#allocation9 + $0xa8] sm:$0xff]   ;;  %497 = vst [vmem:[#allocation2 + $0x40] sm:$0xff] %v5366_v22  ;;  %498 = vst [vmem:[#allocation2 + $0x48] sm:$0x3] %v5366_v22  ;;  %v4924_v24 = vld [vmem:[#allocation9 + $0xe0] sm:$0xff]   ;;  %p5286_p13 = pnand %p5285_p7, %p5931_p12  ;;  %s5290_s9 = scalar_lea.vmem %s5289_s30, 2048 }
  0x74   : > { %4770 = vmatmul.mubr.msk.f32.gmra.mxu0 %vm359_vm0, %v345_v5  ;;  %4422 = vmatprep.subr.bf16.mxu1 %v4918_v18  ;;  %499 = vst [vmem:[#allocation2 + $0x50] sm:$0xff] %v5366_v22  ;;  %500 = vst [vmem:[#allocation2 + $0x58] sm:$0x3] %v5366_v22  ;;  %v4923_v25 = vld [vmem:[#allocation9 + $0x20] sm:$0xff]   ;;  %v4926_v27 = vld [vmem:[#allocation9 + $0x58] sm:$0xff]   ;;  %p5291_p5 = scmp.lt.s32.totalorder %s5811_s10, %s5289_s30  ;;  %p5292_p10 = scmp.lt.s32.totalorder %s5290_s9, %s5284_s15 }
  0x75   : > { %4772 = vmatprep.mubr.msk.f32.mxu0 %vm359_vm0, %v346_v7  ;;  %4461 = vmatpush3.bf16.msra.mxu0 %v4917_v16  ;;  %501 = vst [vmem:[#allocation2 + $0x60] sm:$0xff] %v5366_v22  ;;  %502 = vst [vmem:[#allocation2 + $0x68] sm:$0x3] %v5366_v22  ;;  %v4925_v26 = vld [vmem:[#allocation9 + $0xa0] sm:$0xff]   ;;  %v4928_v28 = vld [vmem:[#allocation9 + $0xd8] sm:$0xff]   ;;  %p5287_p0 = pneg %p5286_p13 }
  0x76   : > { %4462 = vmatprep.subr.bf16.mxu0 %v4920_v19  ;;  %503 = vst [vmem:[#allocation2 + $0x70] sm:$0xff] %v5366_v22  ;;  %504 = vst [vmem:[#allocation2 + $0x78] sm:$0x3] %v5366_v22  ;;  %v4927_v29 = vld [vmem:[#allocation9 + $0x18] sm:$0xff]   ;;  %v4930_v31 = vld [vmem:[#allocation9 + $0x50] sm:$0xff]   ;;  %p5293_p2 = por %p5292_p10, %p5291_p5 }
  0x77   : > { %505 = vst [vmem:[#allocation2 + $0x80] sm:$0xff] %v5366_v22  ;;  %506 = vst [vmem:[#allocation2 + $0x88] sm:$0x3] %v5366_v22  ;;  %4423 = vmatpush3.bf16.msra.mxu1 %v4919_v20  ;;  %v4929_v30 = vld [vmem:[#allocation9 + $0x98] sm:$0xff]   ;;  %v4932_v32 = vld [vmem:[#allocation9 + $0xd0] sm:$0xff]  }
  0x78   : > { %4773 = vmatmul.mubr.msk.f32.gmra.mxu0 %vm359_vm0, %v347_v11  ;;  %507 = vst [vmem:[#allocation2 + $0x90] sm:$0xff] %v5366_v22  ;;  %508 = vst [vmem:[#allocation2 + $0x98] sm:$0x3] %v5366_v22  ;;  %4424 = vmatprep.subr.bf16.mxu1 %v4922_v23  ;;  %v4931_v33 = vld [vmem:[#allocation9 + $0x10] sm:$0xff]   ;;  %v4934_v39 = vld [vmem:[#allocation9 + $0x48] sm:$0xff]   ;;  %p5294_p9 = pnand %p5293_p2, %p5287_p0 }
  0x79   : > { %4775 = vmatprep.mubr.msk.f32.mxu0 %vm359_vm0, %v348_v13  ;;  %4463 = vmatpush3.bf16.msra.mxu0 %v4921_v21  ;;  %v4933_v34 = vld [vmem:[#allocation9 + $0x90] sm:$0xff]   ;;  %v4936_v40 = vld [vmem:[#allocation9 + $0xc8] sm:$0xff]   ;;  %558 = vst [vmem:[#allocation3] sm:$0xf] %v5367_v41  ;;  %854 = vst [vmem:[#allocation3 + $0x114] sm:$0xf] %v5367_v41 }
  0x7a   : > { %4464 = vmatprep.subr.bf16.mxu0 %v4924_v24  ;;  %v566_v35 = vld [vmem:[#allocation2 + $0x1] sm:$0xff]  ;;  %v4935_v42 = vld [vmem:[#allocation9 + $0x8] sm:$0xff]   ;;  %v4938_v44 = vld [vmem:[#allocation9 + $0x40] sm:$0xff]   ;;  %2454 = vst [vmem:[#allocation3 + $0x114] sm:$0xf] %v5367_v41 }
  0x7b   : > { %4425 = vmatpush3.bf16.msra.mxu1 %v4923_v25  ;;  %v4271_v36 = vpack.c.bf16 %v566_v35, %v566_v35  ;;  %v614_v37 = vld [vmem:[#allocation2 + $0x2] sm:$0xff]  ;;  %v4937_v43 = vld [vmem:[#allocation9 + $0x88] sm:$0xff]   ;;  %v4940_v45 = vld [vmem:[#allocation9 + $0xc0] sm:$0xff]  }
  0x7c   : > { %4776 = vmatmul.mubr.msk.f32.gmra.mxu0 %vm359_vm0, %v349_v17  ;;  %4426 = vmatprep.subr.bf16.mxu1 %v4926_v27  ;;  %2091 = vst [vmem:[#allocation2] sm:$0xff] %v5366_v22  ;;  %2092 = vst [vmem:[#allocation2 + $0x8] sm:$0x3] %v5366_v22  ;;  %v4279_v38 = vpack.c.bf16 %v614_v37, %v614_v37  ;;  %v4939_v46 = vld [vmem:[#allocation9] sm:$0xff]   ;;  %v4946_v48 = vld [vmem:[#allocation9 + $0x178] sm:$0xff]  }
  0x7d   : > { %4465 = vmatpush3.bf16.msra.mxu0 %v4925_v26  ;;  %606 = vst [vmem:[#allocation3 + $0x4] sm:$0xf] %v4271_v36  ;;  %v4941_v47 = vld [vmem:[#allocation9 + $0x80] sm:$0xff]   ;;  %v4948_v49 = vld [vmem:[#allocation9 + $0x1f8] sm:$0xff]   ;;  %v5617_v54 = vld [vmem:[%s5857_s2] ss:$0 sm:$0xff] }
  0x7e   : > { %4466 = vmatprep.subr.bf16.mxu0 %v4928_v28  ;;  %654 = vst [vmem:[#allocation3 + $0x8] sm:$0xf] %v4279_v38 }
  0x7f   : > { %4427 = vmatpush3.bf16.msra.mxu1 %v4927_v29  ;;  %v862_v50 = vld [vmem:[#allocation2 + $0x91] sm:$0xff] }
  0x80   : > { %4428 = vmatprep.subr.bf16.mxu1 %v4930_v31  ;;  %v4326_v51 = vpack.c.bf16 %v862_v50, %v862_v50  ;;  %v910_v52 = vld [vmem:[#allocation2 + $0x92] sm:$0xff]  ;;  %v4949_v50 = vld [vmem:[#allocation9 + $0x1b8] sm:$0xff]  }
  0x81   : > { %4467 = vmatpush3.bf16.msra.mxu0 %v4929_v30  ;;  %2109 = vst [vmem:[#allocation2 + $0x90] sm:$0xff] %v5366_v22  ;;  %2110 = vst [vmem:[#allocation2 + $0x98] sm:$0x3] %v5366_v22  ;;  %v4334_v53 = vpack.c.bf16 %v910_v52, %v910_v52 }
  0x82   : > { %4468 = vmatprep.subr.bf16.mxu0 %v4932_v32  ;;  %902 = vst [vmem:[#allocation3 + $0x118] sm:$0xf] %v4326_v51 }
  0x83   : > { %4429 = vmatpush3.bf16.msra.mxu1 %v4931_v33  ;;  %950 = vst [vmem:[#allocation3 + $0x11c] sm:$0xf] %v4334_v53  ;;  %v2167_v30 = vld [vmem:[#allocation2 + $0x1] sm:$0xff] }
  0x84   : > { %4430 = vmatprep.subr.bf16.mxu1 %v4934_v39  ;;  %v2215_v35 = vld [vmem:[#allocation2 + $0x2] sm:$0xff] }
  0x85   : > { %4469 = vmatpush3.bf16.msra.mxu0 %v4933_v34 }
  0x86   : > { %4470 = vmatprep.subr.bf16.mxu0 %v4936_v40  ;;  %v951_v40 = vld [vmem:[#allocation3] sm:$0xff] }
  0x87   : > { %4431 = vmatpush3.bf16.msra.mxu1 %v4935_v42  ;;  %v4343_v42 = vpack.c.bf16 %v2167_v30, %v2167_v30  ;;  %2159 = vst [vmem:[#allocation3] sm:$0xf] %v5367_v41 }
  0x88   : > { %4432 = vmatprep.subr.bf16.mxu1 %v4938_v44 }
  0x89   : > { %4471 = vmatpush3.bf16.msra.mxu0 %v4937_v43 }
  0x8a   : > { %4472 = vmatprep.subr.bf16.mxu0 %v4940_v45  ;;  %v4351_v45 = vpack.c.bf16 %v2215_v35, %v2215_v35  ;;  %v4979_v35 = vld [vmem:[#allocation9 + $0x198] sm:$0xff]  }
  0x8b   : > { %4433 = vmatpush3.bf16.msra.mxu1 %v4939_v46  ;;  %v4947_v46 = vld [vmem:[#allocation9 + $0x138] sm:$0xff]  }
  0x8c   : > { %4498 = vmatprep.subr.bf16.mxu1 %v4946_v48 }
  0x8d   : > { %4473 = vmatpush3.bf16.msra.mxu0 %v4941_v47 }
  0x8e   : > { %4538 = vmatprep.subr.bf16.mxu0 %v4948_v49 }
 0x130   : > { %v4768_v55 = vpop.f32.mrf.mxu0 }
 0x131   : > { %v5620_v56 = vadd.f32 %v4768_v55, %v5617_v54 }
 0x132   : > { %v450_v57 = vpop.f32.mrf.mxu0 }
 0x133   : > { %5893 = vst [vmem:[#allocation17_spill] sm:$0xff] %v5620_v56  ;;  %511 = vst [vmem:[#allocation2 + $0x21] sm:$0xff] %v5620_v56  ;;  %v5624_v58 = vadd.f32 %v5617_v54, %v450_v57  ;;  %v4273_v59 = vpack.c.bf16 %v5620_v56, %v5620_v56 }
 0x134   : > { %v4771_v60 = vpop.f32.mrf.mxu0 }
 0x135   : > { %5894 = vst [vmem:[#allocation18_spill] sm:$0xff] %v5624_v58  ;;  %510 = vst [vmem:[#allocation2 + $0x11] sm:$0xff] %v5624_v58  ;;  %v5630_v61 = vadd.f32 %v4771_v60, %v5617_v54  ;;  %v4272_v62 = vpack.c.bf16 %v5624_v58, %v5624_v58 }
 0x136   : > { %608 = vst [vmem:[#allocation3 + $0x4c] sm:$0xf] %v4273_v59  ;;  %751 = vst [vmem:[#allocation3 + $0x34] sm:$0xf] %v4273_v59  ;;  %v460_v63 = vpop.f32.mrf.mxu0 }
 0x137   : > { %5895 = vst [vmem:[#allocation19_spill] sm:$0xff] %v5630_v61  ;;  %895 = vst [vmem:[#allocation3 + $0x1c] sm:$0xf] %v4273_v59  ;;  %v5636_v0 = vadd.f32 %v5617_v54, %v460_v63  ;;  %v4275_v1 = vpack.c.bf16 %v5630_v61, %v5630_v61 }
 0x138   : > { %513 = vst [vmem:[#allocation2 + $0x41] sm:$0xff] %v5630_v61  ;;  %607 = vst [vmem:[#allocation3 + $0x28] sm:$0xf] %v4272_v62  ;;  %v4774_v2 = vpop.f32.mrf.mxu0 }
 0x139   : > { %5896 = vst [vmem:[#allocation20_spill] sm:$0xff] %v5636_v0  ;;  %750 = vst [vmem:[#allocation3 + $0x10] sm:$0xf] %v4272_v62  ;;  %v5642_v3 = vadd.f32 %v4774_v2, %v5617_v54  ;;  %v4274_v4 = vpack.c.bf16 %v5636_v0, %v5636_v0  ;;  %v4954_v2 = vld [vmem:[#allocation9 + $0x170] sm:$0xff]  }
 0x13a   : > { %512 = vst [vmem:[#allocation2 + $0x31] sm:$0xff] %v5636_v0  ;;  %610 = vst [vmem:[#allocation3 + $0x94] sm:$0xf] %v4275_v1  ;;  %v520_v5 = vld [vmem:[#allocation2 + $0x20] sm:$0xff]  ;;  %v470_v7 = vpop.f32.mrf.mxu0 }
 0x13b   : > { %5897 = vst [vmem:[#allocation21_spill] sm:$0xff] %v5642_v3  ;;  %753 = vst [vmem:[#allocation3 + $0x7c] sm:$0xf] %v4275_v1  ;;  %v616_v6 = vld [vmem:[#allocation2 + $0x22] sm:$0xff]  ;;  %v4265_v8 = vpack.c.bf16 %v520_v5, %v520_v5  ;;  %v5650_v9 = vadd.f32 %v5617_v54, %v470_v7  ;;  %v4277_v11 = vpack.c.bf16 %v5642_v3, %v5642_v3 }
 0x13c   : > { %897 = vst [vmem:[#allocation3 + $0x64] sm:$0xf] %v4275_v1  ;;  %2095 = vst [vmem:[#allocation2 + $0x20] sm:$0xff] %v5366_v22  ;;  %v4281_v10 = vpack.c.bf16 %v616_v6, %v616_v6  ;;  %v519_v12 = vld [vmem:[#allocation2 + $0x10] sm:$0xff]  ;;  %v4777_v14 = vpop.f32.mrf.mxu0  ;;  %v4956_v6 = vld [vmem:[#allocation9 + $0x1f0] sm:$0xff]  }
 0x13d   : > { %2096 = vst [vmem:[#allocation2 + $0x28] sm:$0x3] %v5366_v22  ;;  %515 = vst [vmem:[#allocation2 + $0x61] sm:$0xff] %v5642_v3  ;;  %v615_v13 = vld [vmem:[#allocation2 + $0x12] sm:$0xff]  ;;  %v4287_v15 = vpack.c.bf16 %v519_v12, %v519_v12  ;;  %v5658_v16 = vadd.f32 %v4777_v14, %v5617_v54  ;;  %v4276_v18 = vpack.c.bf16 %v5650_v9, %v5650_v9 }
 0x13e   : > { %5898 = vst [vmem:[#allocation22_spill] sm:$0xff] %v5650_v9  ;;  %609 = vst [vmem:[#allocation3 + $0x70] sm:$0xf] %v4274_v4  ;;  %v4280_v17 = vpack.c.bf16 %v615_v13, %v615_v13  ;;  %v480_v21 = vpop.f32.mrf.mxu0  ;;  %v4961_v12 = vld [vmem:[#allocation9 + $0x1e8] sm:$0xff]  }
 0x13f   : > { %896 = vst [vmem:[#allocation3 + $0x40] sm:$0xf] %v4274_v4  ;;  %752 = vst [vmem:[#allocation3 + $0x58] sm:$0xf] %v4274_v4  ;;  %v522_v19 = vld [vmem:[#allocation2 + $0x40] sm:$0xff]  ;;  %v5666_v25 = vadd.f32 %v5617_v54, %v480_v21  ;;  %v4302_v26 = vpack.c.bf16 %v5658_v16, %v5658_v16  ;;  %v4960_v13 = vld [vmem:[#allocation9 + $0x128] sm:$0xff]  }
 0x140   : > { %560 = vst [vmem:[#allocation3 + $0x48] sm:$0xf] %v4265_v8  ;;  %703 = vst [vmem:[#allocation3 + $0x30] sm:$0xf] %v4265_v8  ;;  %v618_v20 = vld [vmem:[#allocation2 + $0x42] sm:$0xff]  ;;  %v4267_v23 = vpack.c.bf16 %v522_v19, %v522_v19  ;;  %v4969_v19 = vld [vmem:[#allocation9 + $0x1e0] sm:$0xff]  }
 0x141   : > { %847 = vst [vmem:[#allocation3 + $0x18] sm:$0xf] %v4265_v8  ;;  %2093 = vst [vmem:[#allocation2 + $0x10] sm:$0xff] %v5366_v22  ;;  %v4329_v24 = vpack.c.bf16 %v618_v20, %v618_v20  ;;  %v521_v27 = vld [vmem:[#allocation2 + $0x30] sm:$0xff]  ;;  %v4278_v32 = vpack.c.bf16 %v5666_v25, %v5666_v25  ;;  %v4942_v52 = vld [vmem:[#allocation3 + $0x4] ss:$36 sps:$4 sm:$0xff]  }
 0x142   : > { %2094 = vst [vmem:[#allocation2 + $0x18] sm:$0x3] %v5366_v22  ;;  %514 = vst [vmem:[#allocation2 + $0x51] sm:$0xff] %v5650_v9  ;;  %v617_v28 = vld [vmem:[#allocation2 + $0x32] sm:$0xff]  ;;  %v4266_v29 = vpack.c.bf16 %v521_v27, %v521_v27  ;;  %1790 = vmatprep.mubr.bf16.mxu1 %v4942_v52  ;;  %v4955_v8 = vld [vmem:[#allocation9 + $0x130] sm:$0xff]  }
 0x143   : > { %5899 = vst [vmem:[#allocation23_spill] sm:$0xff] %v5658_v16  ;;  %656 = vst [vmem:[#allocation3 + $0x50] sm:$0xf] %v4281_v10  ;;  %v4282_v31 = vpack.c.bf16 %v617_v28, %v617_v28  ;;  %v4968_v21 = vld [vmem:[#allocation9 + $0x120] sm:$0xff]   ;;  %v4971_v28 = vld [vmem:[#allocation9 + $0x158] sm:$0xff]  }
 0x144   : > { %612 = vst [vmem:[#allocation3 + $0xdc] sm:$0xf] %v4277_v11  ;;  %799 = vst [vmem:[#allocation3 + $0x38] sm:$0xf] %v4281_v10  ;;  %v524_v33 = vld [vmem:[#allocation2 + $0x60] sm:$0xff]  ;;  %v4970_v27 = vld [vmem:[#allocation9 + $0x1a0] sm:$0xff]  }
 0x145   : > { %755 = vst [vmem:[#allocation3 + $0xc4] sm:$0xf] %v4277_v11  ;;  %899 = vst [vmem:[#allocation3 + $0xac] sm:$0xf] %v4277_v11  ;;  %v620_v34 = vld [vmem:[#allocation2 + $0x62] sm:$0xff]  ;;  %v4269_v36 = vpack.c.bf16 %v524_v33, %v524_v33 }
 0x146   : > { %943 = vst [vmem:[#allocation3 + $0x20] sm:$0xf] %v4281_v10  ;;  %702 = vst [vmem:[#allocation3 + $0xc] sm:$0xf] %v4287_v15  ;;  %v4285_v37 = vpack.c.bf16 %v620_v34, %v620_v34  ;;  %v4950_v5 = vld [vmem:[#allocation3 + $0x4c] ss:$36 sps:$4 sm:$0xff]  }
 0x147   : > { %2099 = vst [vmem:[#allocation2 + $0x40] sm:$0xff] %v5366_v22  ;;  %2100 = vst [vmem:[#allocation2 + $0x48] sm:$0x3] %v5366_v22  ;;  %v4958_v10 = vld [vmem:[#allocation9 + $0x168] sm:$0xff]   ;;  %v961_v14 = vld [vmem:[#allocation3 + $0x48] sm:$0xff] }
 0x148   : > { %517 = vst [vmem:[#allocation2 + $0x81] sm:$0xff] %v5658_v16  ;;  %5900 = vst [vmem:[#allocation24_spill] sm:$0xff] %v5666_v25  ;;  %v4974_v33 = vld [vmem:[#allocation9 + $0x1d8] sm:$0xff]  }
 0x149   : > { %559 = vst [vmem:[#allocation3 + $0x24] sm:$0xf] %v4287_v15  ;;  %655 = vst [vmem:[#allocation3 + $0x2c] sm:$0xf] %v4280_v17  ;;  %v523_v38 = vld [vmem:[#allocation2 + $0x50] sm:$0xff]  ;;  %v4966_v15 = vld [vmem:[#allocation9 + $0x1a8] sm:$0xff]  }
 0x14a   : > { %611 = vst [vmem:[#allocation3 + $0xb8] sm:$0xf] %v4276_v18  ;;  %798 = vst [vmem:[#allocation3 + $0x14] sm:$0xf] %v4280_v17  ;;  %v619_v39 = vld [vmem:[#allocation2 + $0x52] sm:$0xff]  ;;  %v4268_v43 = vpack.c.bf16 %v523_v38, %v523_v38 }
 0x14b   : > { %898 = vst [vmem:[#allocation3 + $0x88] sm:$0xf] %v4276_v18  ;;  %754 = vst [vmem:[#allocation3 + $0xa0] sm:$0xf] %v4276_v18  ;;  %v4330_v44 = vpack.c.bf16 %v619_v39, %v619_v39  ;;  %v4967_v17 = vld [vmem:[#allocation9 + $0x160] sm:$0xff]   ;;  %v4982_v39 = vld [vmem:[#allocation9 + $0x1d0] sm:$0xff]  }
 0x14c   : > { %562 = vst [vmem:[#allocation3 + $0x90] sm:$0xf] %v4267_v23  ;;  %705 = vst [vmem:[#allocation3 + $0x78] sm:$0xf] %v4267_v23 }
 0x14d   : > { %849 = vst [vmem:[#allocation3 + $0x60] sm:$0xf] %v4267_v23  ;;  %945 = vst [vmem:[#allocation3 + $0x68] sm:$0xf] %v4329_v24  ;;  %v952_v53 = vld [vmem:[#allocation3 + $0x8] sm:$0xff]  ;;  %v2462_v23 = vld [vmem:[#allocation2 + $0x91] sm:$0xff] }
 0x14e   : > { %2097 = vst [vmem:[#allocation2 + $0x30] sm:$0xff] %v5366_v22  ;;  %2098 = vst [vmem:[#allocation2 + $0x38] sm:$0x3] %v5366_v22  ;;  %v4944_v62 = vld [vmem:[#allocation3 + $0xc] ss:$36 sps:$4 sm:$0xff]  }
 0x14f   : > { %516 = vst [vmem:[#allocation2 + $0x71] sm:$0xff] %v5666_v25  ;;  %658 = vst [vmem:[#allocation3 + $0x98] sm:$0xf] %v4329_v24  ;;  %v669_v47 = vld [vmem:[#allocation2 + $0x80] sm:$0xff]  ;;  %1855 = vmatprep.mubr.bf16.mxu0 %v4944_v62  ;;  %v4994_v62 = vld [vmem:[#allocation9 + $0x100] sm:$0xff]  }
 0x150   : > { %801 = vst [vmem:[#allocation3 + $0x80] sm:$0xf] %v4329_v24  ;;  %757 = vst [vmem:[#allocation3 + $0x10c] sm:$0xf] %v4302_v26  ;;  %v765_v48 = vld [vmem:[#allocation2 + $0x82] sm:$0xff]  ;;  %v4294_v51 = vpack.c.bf16 %v669_v47, %v669_v47  ;;  %v957_v54 = vld [vmem:[#allocation3 + $0x2c] sm:$0xff] }
 0x151   : > { %901 = vst [vmem:[#allocation3 + $0xf4] sm:$0xf] %v4302_v26  ;;  %561 = vst [vmem:[#allocation3 + $0x6c] sm:$0xf] %v4266_v29  ;;  %v956_v49 = vld [vmem:[#allocation3 + $0x24] sm:$0xff]  ;;  %v4310_v57 = vpack.c.bf16 %v765_v48, %v765_v48  ;;  %v3962_v63 = vcombine.low %v952_v53, %v957_v54  ;;  %v4984_v47 = vld [vmem:[#allocation9 + $0x148] sm:$0xff]  }
 0x152   : > { %704 = vst [vmem:[#allocation3 + $0x54] sm:$0xf] %v4266_v29  ;;  %848 = vst [vmem:[#allocation3 + $0x3c] sm:$0xf] %v4266_v29  ;;  %v3960_v55 = vcombine.low %v951_v40, %v956_v49  ;;  %v4962_v24 = vld [vmem:[#allocation3 + $0x94] ss:$36 sps:$4 sm:$0xff]  }
 0x153   : > { %2103 = vst [vmem:[#allocation2 + $0x60] sm:$0xff] %v5366_v22  ;;  %2104 = vst [vmem:[#allocation2 + $0x68] sm:$0x3] %v5366_v22  ;;  %1856 = vmatmul.mubr.bf16.vlgmr.msra.gmra.mxu0 %v3962_v63  ;;  %v2510_v29 = vld [vmem:[#allocation2 + $0x92] sm:$0xff]  ;;  %v4983_v49 = vld [vmem:[#allocation9 + $0x190] sm:$0xff]  }
 0x154   : > { %657 = vst [vmem:[#allocation3 + $0x74] sm:$0xf] %v4282_v31  ;;  %613 = vst [vmem:[#allocation3 + $0x100] sm:$0xf] %v4278_v32  ;;  %1791 = vmatmul.mubr.bf16.vlgmr.msra.gmra.mxu1 %v3960_v55  ;;  %4539 = vmatpush3.bf16.msra.mxu0 %v4949_v50  ;;  %v971_v34 = vld [vmem:[#allocation3 + $0x90] sm:$0xff]  ;;  %v4987_v50 = vld [vmem:[#allocation9 + $0x1c8] sm:$0xff]  }
 0x155   : > { %800 = vst [vmem:[#allocation3 + $0x5c] sm:$0xf] %v4282_v31  ;;  %900 = vst [vmem:[#allocation3 + $0xd0] sm:$0xf] %v4278_v32  ;;  %4499 = vmatpush3.bf16.msra.mxu1 %v4947_v46  ;;  %1798 = vmatprep.mubr.bf16.mxu1 %v4950_v5  ;;  %v4990_v54 = vld [vmem:[#allocation9 + $0x188] sm:$0xff]   ;;  %v4993_v55 = vld [vmem:[#allocation9 + $0x140] sm:$0xff]  }
 0x156   : > { %756 = vst [vmem:[#allocation3 + $0xe8] sm:$0xf] %v4278_v32  ;;  %944 = vst [vmem:[#allocation3 + $0x44] sm:$0xf] %v4282_v31  ;;  %v525_v59 = vld [vmem:[#allocation2 + $0x70] sm:$0xff]  ;;  %4500 = vmatprep.subr.bf16.mxu1 %v4954_v2  ;;  %4540 = vmatprep.subr.bf16.mxu0 %v4956_v6  ;;  %v4398_v31 = vpack.c.bf16 %v2462_v23, %v2462_v23  ;;  %v4973_v32 = vld [vmem:[#allocation9 + $0x118] sm:$0xff]  }
 0x157   : > { %564 = vst [vmem:[#allocation3 + $0xd8] sm:$0xf] %v4269_v36  ;;  %707 = vst [vmem:[#allocation3 + $0xc0] sm:$0xf] %v4269_v36  ;;  %v621_v60 = vld [vmem:[#allocation2 + $0x72] sm:$0xff]  ;;  %v4270_v1 = vpack.c.bf16 %v525_v59, %v525_v59  ;;  %v4997_v63 = vld [vmem:[#allocation9 + $0x238] sm:$0xff]  }
 0x158   : > { %851 = vst [vmem:[#allocation3 + $0xa8] sm:$0xf] %v4269_v36  ;;  %2101 = vst [vmem:[#allocation2 + $0x50] sm:$0xff] %v5366_v22  ;;  %v4286_v4 = vpack.c.bf16 %v621_v60, %v621_v60  ;;  %v966_v11 = vld [vmem:[#allocation3 + $0x6c] sm:$0xff]  ;;  %v4980_v36 = vld [vmem:[#allocation9 + $0x150] sm:$0xff]  }
 0x159   : > { %2102 = vst [vmem:[#allocation2 + $0x58] sm:$0x3] %v5366_v22  ;;  %660 = vst [vmem:[#allocation3 + $0xe0] sm:$0xf] %v4285_v37  ;;  %v4952_v7 = vld [vmem:[#allocation3 + $0x54] ss:$36 sps:$4 sm:$0xff]   ;;  %4501 = vmatpush3.bf16.msra.mxu1 %v4955_v8  ;;  %v3969_v18 = vcombine.low %v961_v14, %v966_v11 }
 0x15a   : > { %803 = vst [vmem:[#allocation3 + $0xc8] sm:$0xf] %v4285_v37  ;;  %947 = vst [vmem:[#allocation3 + $0xb0] sm:$0xf] %v4285_v37  ;;  %1863 = vmatprep.mubr.bf16.mxu0 %v4952_v7  ;;  %4502 = vmatprep.subr.bf16.mxu1 %v4958_v10  ;;  %v5684_v40 = vld [vmem:[#allocation3 + $0xf4] ss:$36 sps:$4 sm:$0xff]  }
 0x15b   : > { %563 = vst [vmem:[#allocation3 + $0xb4] sm:$0xf] %v4268_v43  ;;  %706 = vst [vmem:[#allocation3 + $0x9c] sm:$0xf] %v4268_v43  ;;  %v4959_v20 = vld [vmem:[#allocation3 + $0x50] ss:$36 sps:$4 sm:$0xff]  }
 0x15c   : > { %850 = vst [vmem:[#allocation3 + $0x84] sm:$0xf] %v4268_v43  ;;  %946 = vst [vmem:[#allocation3 + $0x8c] sm:$0xf] %v4330_v44  ;;  %1799 = vmatmul.mubr.bf16.gmra.mxu1 %v3969_v18  ;;  %1864 = vmatmul.mubr.bf16.gmra.mxu0 %v4959_v20  ;;  %v4975_v43 = vld [vmem:[#allocation3 + $0xdc] ss:$36 sps:$4 sm:$0xff]  }
 0x15d   : > { %2107 = vst [vmem:[#allocation2 + $0x80] sm:$0xff] %v5366_v22  ;;  %2108 = vst [vmem:[#allocation2 + $0x88] sm:$0x3] %v5366_v22  ;;  %4503 = vmatpush3.bf16.msra.mxu1 %v4960_v13  ;;  %1806 = vmatprep.mubr.bf16.mxu1 %v4962_v24  ;;  %v4991_v59 = vld [vmem:[#allocation3 + $0x1c] ss:$36 sps:$4 sm:$0xff]   ;;  %v4995_v60 = vld [vmem:[#allocation9 + $0x1c0] sm:$0xff]  }
 0x15e   : > { %659 = vst [vmem:[#allocation3 + $0xbc] sm:$0xf] %v4330_v44  ;;  %802 = vst [vmem:[#allocation3 + $0xa4] sm:$0xf] %v4330_v44  ;;  %4504 = vmatprep.subr.bf16.mxu1 %v4967_v17  ;;  %v981_v41 = vld [vmem:[#allocation3 + $0xd8] sm:$0xff]  ;;  %v5012_v10 = vld [vmem:[#allocation9 + $0x220] sm:$0xff]  }
 0x15f   : > { %2207 = vst [vmem:[#allocation3 + $0x4] sm:$0xf] %v4343_v42  ;;  %709 = vst [vmem:[#allocation3 + $0x108] sm:$0xf] %v4294_v51  ;;  %v4406_v42 = vpack.c.bf16 %v2510_v29, %v2510_v29  ;;  %v4998_v2 = vld [vmem:[#allocation3 + $0x10] ss:$36 sps:$4 sm:$0xff]  }
 0x160   : > { %853 = vst [vmem:[#allocation3 + $0xf0] sm:$0xf] %v4294_v51  ;;  %2105 = vst [vmem:[#allocation2 + $0x70] sm:$0xff] %v5366_v22  ;;  %v4986_v51 = vld [vmem:[#allocation9 + $0x108] sm:$0xff]   ;;  %v5002_v7 = vld [vmem:[#allocation3 + $0x64] ss:$36 sps:$4 sm:$0xff]  }
 0x161   : > { %2106 = vst [vmem:[#allocation2 + $0x78] sm:$0x3] %v5366_v22  ;;  %2255 = vst [vmem:[#allocation3 + $0x8] sm:$0xf] %v4351_v45  ;;  %v4957_v22 = vld [vmem:[#allocation9 + $0x1b0] sm:$0xff]   ;;  %4505 = vmatpush3.bf16.msra.mxu1 %v4968_v21  ;;  %v5005_v8 = vld [vmem:[#allocation9 + $0x228] sm:$0xff]  }
 0x162   : > { %805 = vst [vmem:[#allocation3 + $0x110] sm:$0xf] %v4310_v57  ;;  %949 = vst [vmem:[#allocation3 + $0xf8] sm:$0xf] %v4310_v57  ;;  %4541 = vmatpush3.bf16.msra.mxu0 %v4957_v22  ;;  %v4964_v26 = vld [vmem:[#allocation3 + $0x9c] ss:$36 sps:$4 sm:$0xff]   ;;  %4506 = vmatprep.subr.bf16.mxu1 %v4971_v28 }
 0x163   : > { %565 = vst [vmem:[#allocation3 + $0xfc] sm:$0xf] %v4270_v1  ;;  %708 = vst [vmem:[#allocation3 + $0xe4] sm:$0xf] %v4270_v1  ;;  %4542 = vmatprep.subr.bf16.mxu0 %v4961_v12  ;;  %1871 = vmatprep.mubr.bf16.mxu0 %v4964_v26  ;;  %v976_v30 = vld [vmem:[#allocation3 + $0xb4] sm:$0xff]  ;;  %v4981_v45 = vld [vmem:[#allocation9 + $0x110] sm:$0xff]  }
 0x164   : > { %852 = vst [vmem:[#allocation3 + $0xcc] sm:$0xf] %v4270_v1  ;;  %661 = vst [vmem:[#allocation3 + $0x104] sm:$0xf] %v4286_v4  ;;  %v3978_v37 = vcombine.low %v971_v34, %v976_v30  ;;  %v4988_v57 = vld [vmem:[#allocation3 + $0x14] ss:$36 sps:$4 sm:$0xff]  }
 0x165   : > { %804 = vst [vmem:[#allocation3 + $0xec] sm:$0xf] %v4286_v4  ;;  %948 = vst [vmem:[#allocation3 + $0xd4] sm:$0xf] %v4286_v4  ;;  %v4972_v38 = vld [vmem:[#allocation3 + $0x98] ss:$36 sps:$4 sm:$0xff]   ;;  %4507 = vmatpush3.bf16.msra.mxu1 %v4973_v32 }
 0x166   : > { %4543 = vmatpush3.bf16.msra.mxu0 %v4966_v15  ;;  %2502 = vst [vmem:[#allocation3 + $0x118] sm:$0xf] %v4398_v31  ;;  %1807 = vmatmul.mubr.bf16.gmra.mxu1 %v3978_v37  ;;  %v4996_v1 = vld [vmem:[#allocation9 + $0x180] sm:$0xff]   ;;  %v5004_v4 = vld [vmem:[#allocation9 + $0x230] sm:$0xff]   ;;  %v4999_v6 = vld [vmem:[#allocation3 + $0x18] ss:$36 sps:$4 sm:$0xff]  }
 0x167   : > { %4544 = vmatprep.subr.bf16.mxu0 %v4969_v19  ;;  %1872 = vmatmul.mubr.bf16.gmra.mxu0 %v4972_v38  ;;  %v5000_v5 = vld [vmem:[#allocation3 + $0x5c] ss:$36 sps:$4 sm:$0xff]   ;;  %v5008_v11 = vld [vmem:[#allocation3 + $0xa4] ss:$36 sps:$4 sm:$0xff]   ;;  %v5010_v13 = vld [vmem:[#allocation3 + $0xac] ss:$36 sps:$4 sm:$0xff]  }
 0x168   : > { %1814 = vmatprep.mubr.bf16.mxu1 %v4975_v43  ;;  %4508 = vmatprep.subr.bf16.mxu1 %v4980_v36  ;;  %v5006_v22 = vld [vmem:[#allocation3 + $0x58] ss:$36 sps:$4 sm:$0xff]   ;;  %v5007_v12 = vld [vmem:[#allocation3 + $0x60] ss:$36 sps:$4 sm:$0xff]   ;;  %v5013_v14 = vld [vmem:[#allocation9 + $0x218] sm:$0xff]  }
 0x169   : > { %v5687_v46 = vld [vmem:[#allocation3 + $0xf8] ss:$36 sps:$4 sm:$0xff]   ;;  %4509 = vmatpush3.bf16.msra.mxu1 %v4981_v45  ;;  %v5014_v15 = vld [vmem:[#allocation3 + $0xa0] ss:$36 sps:$4 sm:$0xff]   ;;  %v988_v23 = vld [vmem:[#allocation3 + $0x10c] sm:$0xff] }
 0x16a   : > { %4545 = vmatpush3.bf16.msra.mxu0 %v4970_v27  ;;  %v4977_v44 = vld [vmem:[#allocation3 + $0xe4] ss:$36 sps:$4 sm:$0xff]   ;;  %2550 = vst [vmem:[#allocation3 + $0x11c] sm:$0xf] %v4406_v42  ;;  %v986_v48 = vld [vmem:[#allocation3 + $0xfc] sm:$0xff]  ;;  %4510 = vmatprep.subr.bf16.mxu1 %v4984_v47  ;;  %v984_v24 = vld [vmem:[#allocation3 + $0xf0] sm:$0xff] }
 0x16b   : > { %4546 = vmatprep.subr.bf16.mxu0 %v4974_v33  ;;  %1879 = vmatprep.mubr.bf16.mxu0 %v4977_v44  ;;  %v3987_v52 = vcombine.low %v981_v41, %v986_v48  ;;  %v4985_v53 = vld [vmem:[#allocation3 + $0xe0] ss:$36 sps:$4 sm:$0xff]   ;;  %v5015_v19 = vld [vmem:[#allocation3 + $0xa8] ss:$36 sps:$4 sm:$0xff]   ;;  %v5021_v20 = vld [vmem:[#allocation9 + $0x208] sm:$0xff]  }
 0x16c   : > { %v5020_v17 = vld [vmem:[#allocation9 + $0x210] sm:$0xff]   ;;  %v5016_v18 = vld [vmem:[#allocation3 + $0xec] ss:$36 sps:$4 sm:$0xff]   ;;  %v5040_v47 = vld [vmem:[#allocation10 + $0xa8] sm:$0xff]  }
 0x16d   : > { %4511 = vmatpush3.bf16.msra.mxu1 %v4986_v51  ;;  %v983_v21 = vld [vmem:[#allocation3 + $0xe8] sm:$0xff]  ;;  %v989_v26 = vld [vmem:[#allocation3 + $0x114] sm:$0xff]  ;;  %v5022_v29 = vld [vmem:[#allocation3 + $0x20] ss:$36 sps:$4 sm:$0xff]  }
 0x16e   : > { %4547 = vmatpush3.bf16.msra.mxu0 %v4979_v35  ;;  %1815 = vmatmul.mubr.bf16.gmra.mxu1 %v3987_v52  ;;  %v3991_v27 = vcombine.low %v983_v21, %v988_v23  ;;  %v5023_v28 = vld [vmem:[#allocation9 + $0x200] sm:$0xff]   ;;  %v3993_v30 = vcombine.low %v984_v24, %v989_v26  ;;  %v5024_v31 = vld [vmem:[#allocation3 + $0x68] ss:$36 sps:$4 sm:$0xff]   ;;  %v5029_v35 = vld [vmem:[#allocation10 + $0x70] sm:$0xff]  }
 0x16f   : > { %4548 = vmatprep.subr.bf16.mxu0 %v4982_v39  ;;  %1880 = vmatmul.mubr.bf16.gmra.mxu0 %v4985_v53  ;;  %v5025_v32 = vld [vmem:[#allocation3 + $0xb0] ss:$36 sps:$4 sm:$0xff]   ;;  %v5027_v33 = vld [vmem:[#allocation10 + $0x78] sm:$0xff]   ;;  %v5030_v36 = vld [vmem:[#allocation10 + $0x30] sm:$0xff]  }
 0x170   : > { %1920 = vmatprep.mubr.bf16.mxu1 %v4988_v57  ;;  %1985 = vmatprep.mubr.bf16.mxu0 %v4991_v59  ;;  %v5028_v34 = vld [vmem:[#allocation10 + $0x38] sm:$0xff]   ;;  %v5033_v39 = vld [vmem:[#allocation10 + $0x68] sm:$0xff]   ;;  %v5035_v42 = vld [vmem:[#allocation10 + $0xf0] sm:$0xff]  }
 0x171   : > { %4512 = vmatprep.subr.bf16.mxu1 %v4993_v55  ;;  %v5031_v37 = vld [vmem:[#allocation10 + $0xf8] sm:$0xff]   ;;  %v5036_v43 = vld [vmem:[#allocation10 + $0xb0] sm:$0xff]   ;;  %v5037_v44 = vld [vmem:[#allocation10 + $0x60] sm:$0xff]  }
 0x172   : > { %4549 = vmatpush3.bf16.msra.mxu0 %v4983_v49  ;;  %4513 = vmatpush3.bf16.msra.mxu1 %v4994_v62  ;;  %v5032_v38 = vld [vmem:[#allocation10 + $0xb8] sm:$0xff]   ;;  %v5038_v45 = vld [vmem:[#allocation10 + $0x20] sm:$0xff]   ;;  %v5045_v51 = vld [vmem:[#allocation10 + $0x50] sm:$0xff]  }
 0x173   : > { %4550 = vmatprep.subr.bf16.mxu0 %v4987_v50  ;;  %4778 = vmatprep.subr.bf16.mxu1 %v4997_v63  ;;  %v5041_v48 = vld [vmem:[#allocation10 + $0x58] sm:$0xff]   ;;  %v5043_v50 = vld [vmem:[#allocation10 + $0xe0] sm:$0xff]   ;;  %v5046_v52 = vld [vmem:[#allocation10 + $0x10] sm:$0xff]  }
 0x174   : > { %v5042_v49 = vld [vmem:[#allocation10 + $0x18] sm:$0xff]   ;;  %v5044_v41 = vld [vmem:[#allocation10 + $0xa0] sm:$0xff]   ;;  %v5049_v55 = vld [vmem:[#allocation10 + $0x48] sm:$0xff]  }
 0x175   : > { %v5047_v53 = vld [vmem:[#allocation10 + $0xd8] sm:$0xff]   ;;  %v5051_v57 = vld [vmem:[#allocation10 + $0xd0] sm:$0xff]   ;;  %v5050_v59 = vld [vmem:[#allocation10 + $0x8] sm:$0xff]  }
 0x176   : > { %4551 = vmatpush3.bf16.msra.mxu0 %v4990_v54  ;;  %1921 = vmatmul.mubr.bf16.vlgmr.msra.gmra.mxu1 %v4998_v2  ;;  %v5048_v54 = vld [vmem:[#allocation10 + $0x98] sm:$0xff]   ;;  %v5053_v62 = vld [vmem:[#allocation10 + $0x40] sm:$0xff]   ;;  %v5056_v2 = vld [vmem:[#allocation10 + $0x88] sm:$0xff]  }
 0x177   : > { %4552 = vmatprep.subr.bf16.mxu0 %v4995_v60  ;;  %4779 = vmatpush3.bf16.msra.mxu1 %v4997_v63  ;;  %v5052_v60 = vld [vmem:[#allocation10 + $0x90] sm:$0xff]   ;;  %v5055_v63 = vld [vmem:[#allocation10 + $0xc8] sm:$0xff]  }
 0x178   : > { %1928 = vmatprep.mubr.bf16.mxu1 %v5000_v5  ;;  %4780 = vmatprep.subr.bf16.mxu1 %v5004_v4  ;;  %v5061_v5 = vld [vmem:[#allocation10 + $0xc0] sm:$0xff]  }
 0x17a   : > { %4553 = vmatpush3.bf16.msra.mxu0 %v4996_v1  ;;  %v5054_v1 = vld [vmem:[#allocation10] sm:$0xff]  }
 0x17b   : > { %4781 = vmatpush3.bf16.msra.mxu1 %v5004_v4  ;;  %4590 = vmatprep.subr.bf16.mxu0 %v5027_v33  ;;  %v5060_v4 = vld [vmem:[#allocation10 + $0x178] sm:$0xff]  }
 0x17c   : > { %4782 = vmatprep.subr.bf16.mxu1 %v5005_v8 }
 0x17d   : > { %1986 = vmatmul.mubr.bf16.vlgmr.msra.gmra.mxu0 %v4999_v6  ;;  %v5063_v6 = vld [vmem:[#allocation10 + $0x80] sm:$0xff]  }
 0x17e   : > { %1993 = vmatprep.mubr.bf16.mxu0 %v5002_v7  ;;  %1929 = vmatmul.mubr.bf16.gmra.mxu1 %v5006_v22  ;;  %v5071_v7 = vld [vmem:[#allocation10 + $0x1f8] sm:$0xff]  }
 0x17f   : > { %4783 = vmatpush3.bf16.msra.mxu1 %v5005_v8  ;;  %1936 = vmatprep.mubr.bf16.mxu1 %v5008_v11 }
 0x180   : > { %4784 = vmatprep.subr.bf16.mxu1 %v5012_v10  ;;  %4591 = vmatpush3.bf16.msra.mxu0 %v5028_v34 }
 0x181   : > { %4592 = vmatprep.subr.bf16.mxu0 %v5029_v35 }
 0x183   : > { %4785 = vmatpush3.bf16.msra.mxu1 %v5012_v10 }
 0x184   : > { %4786 = vmatprep.subr.bf16.mxu1 %v5013_v14  ;;  %4593 = vmatpush3.bf16.msra.mxu0 %v5030_v36 }
 0x185   : > { %1994 = vmatmul.mubr.bf16.gmra.mxu0 %v5007_v12  ;;  %4594 = vmatprep.subr.bf16.mxu0 %v5033_v39 }
 0x186   : > { %2001 = vmatprep.mubr.bf16.mxu0 %v5010_v13  ;;  %1937 = vmatmul.mubr.bf16.gmra.mxu1 %v5014_v15 }
 0x187   : > { %4787 = vmatpush3.bf16.msra.mxu1 %v5013_v14  ;;  %1944 = vmatprep.mubr.bf16.mxu1 %v5016_v18 }
 0x188   : > { %4788 = vmatprep.subr.bf16.mxu1 %v5020_v17 }
 0x18b   : > { %4789 = vmatpush3.bf16.msra.mxu1 %v5020_v17 }
 0x18c   : > { %4790 = vmatprep.subr.bf16.mxu1 %v5021_v20 }
 0x18d   : > { %2002 = vmatmul.mubr.bf16.gmra.mxu0 %v5015_v19 }
 0x18e   : > { %2009 = vmatprep.mubr.bf16.mxu0 %v5684_v40  ;;  %1945 = vmatmul.mubr.bf16.gmra.mxu1 %v3991_v27  ;;  %v5034_v40 = vld [vmem:[#allocation10 + $0x28] sm:$0xff]  }
 0x18f   : > { %4791 = vmatpush3.bf16.msra.mxu1 %v5021_v20  ;;  %4794 = vmatprep.mubr.bf16.mxu1 %v5022_v29 }
 0x190   : > { %4792 = vmatprep.subr.bf16.mxu1 %v5023_v28  ;;  %4595 = vmatpush3.bf16.msra.mxu0 %v5034_v40 }
 0x191   : > { %4596 = vmatprep.subr.bf16.mxu0 %v5037_v44 }
 0x193   : > { %4793 = vmatpush3.bf16.msra.mxu1 %v5023_v28 }
 0x194   : > { %4630 = vmatprep.subr.bf16.mxu1 %v5031_v37  ;;  %4597 = vmatpush3.bf16.msra.mxu0 %v5038_v45 }
 0x195   : > { %2010 = vmatmul.mubr.bf16.gmra.mxu0 %v3993_v30  ;;  %4598 = vmatprep.subr.bf16.mxu0 %v5041_v48 }
 0x196   : > { %4795 = vmatmul.mubr.bf16.vlgmr.msra.gmra.mxu1 %v5024_v31 }
 0x197   : > { %4798 = vmatprep.mubr.bf16.mxu1 %v5025_v32  ;;  %4631 = vmatpush3.bf16.msra.mxu1 %v5032_v38 }
 0x198   : > { %4632 = vmatprep.subr.bf16.mxu1 %v5035_v42  ;;  %4599 = vmatpush3.bf16.msra.mxu0 %v5042_v49 }
 0x199   : > { %4600 = vmatprep.subr.bf16.mxu0 %v5045_v51 }
 0x19b   : > { %4633 = vmatpush3.bf16.msra.mxu1 %v5036_v43 }
 0x19c   : > { %4601 = vmatpush3.bf16.msra.mxu0 %v5046_v52 }
 0x19d   : > { %4602 = vmatprep.subr.bf16.mxu0 %v5049_v55 }
 0x19e   : > { %4799 = vmatmul.mubr.bf16.gmra.mxu1 %v5687_v46  ;;  %v5039_v46 = vld [vmem:[#allocation10 + $0xe8] sm:$0xff]  }
 0x19f   : > { %4634 = vmatprep.subr.bf16.mxu1 %v5039_v46 }
 0x1a0   : > { %4635 = vmatpush3.bf16.msra.mxu1 %v5040_v47  ;;  %4603 = vmatpush3.bf16.msra.mxu0 %v5050_v59 }
 0x1a1   : > { %4636 = vmatprep.subr.bf16.mxu1 %v5043_v50  ;;  %4604 = vmatprep.subr.bf16.mxu0 %v5053_v62 }
 0x1a4   : > { %4637 = vmatpush3.bf16.msra.mxu1 %v5044_v41  ;;  %4605 = vmatpush3.bf16.msra.mxu0 %v5054_v1 }
 0x1a5   : > { %4638 = vmatprep.subr.bf16.mxu1 %v5047_v53  ;;  %4670 = vmatprep.subr.bf16.mxu0 %v5060_v4 }
 0x1a8   : > { %4639 = vmatpush3.bf16.msra.mxu1 %v5048_v54 }
 0x1a9   : > { %4640 = vmatprep.subr.bf16.mxu1 %v5051_v57 }
 0x1ac   : > { %4641 = vmatpush3.bf16.msra.mxu1 %v5052_v60 }
 0x1ad   : > { %4642 = vmatprep.subr.bf16.mxu1 %v5055_v63 }
 0x1b0   : > { %4643 = vmatpush3.bf16.msra.mxu1 %v5056_v2 }
 0x1b1   : > { %4644 = vmatprep.subr.bf16.mxu1 %v5061_v5  ;;  %v3959_v5 = vld [vmem:[%s5859_s4] ss:$0 sm:$0xff] }
 0x1b4   : > { %4645 = vmatpush3.bf16.msra.mxu1 %v5063_v6 }
 0x1b5   : > { %4710 = vmatprep.subr.bf16.mxu1 %v5071_v7 }
 0x213   : > { %v5691_v22 = vpop.f32.mrf.mxu0 }
 0x214   : > { %v4434_v8 = vpop.f32.mrf.mxu1 }
 0x215   : > { %v5693_v11 = vpop.f32.mrf.mxu0 }
 0x216   : > { %v4435_v10 = vpop.f32.mrf.mxu1 }
 0x217   : > { %v5695_v13 = vpop.f32.mrf.mxu0  ;;  %v4436_v4 = vadd.f32 %v4435_v10, %v4434_v8 }
 0x218   : > { %v4437_v12 = vpop.f32.mrf.mxu1 }
 0x219   : > { %v5697_v15 = vpop.f32.mrf.mxu0  ;;  %v1793_v61 = vadd.f32 %v4436_v4, %v3959_v5 }
 0x21a   : > { %v4438_v14 = vpop.f32.mrf.mxu1 }
 0x21b   : > { %v4439_v9 = vadd.f32 %v4438_v14, %v4437_v12 }
 0x21c   : > { %v4440_v17 = vpop.f32.mrf.mxu1  ;;  %v4480_v18 = vpop.f32.mrf.mxu0 }
 0x21e   : > { %v4441_v19 = vpop.f32.mrf.mxu1  ;;  %v4481_v20 = vpop.f32.mrf.mxu0 }
 0x21f   : > { %v4442_v63 = vadd.f32 %v4441_v19, %v4440_v17  ;;  %v4482_v17 = vadd.f32 %v4481_v20, %v4480_v18  ;;  %v4479_v20 = vadd.f32 %v5697_v15, %v5695_v13 }
 0x220   : > { %v4443_v21 = vpop.f32.mrf.mxu1  ;;  %v4483_v23 = vpop.f32.mrf.mxu0 }
 0x221   : > { %v1801_v16 = vadd.f32 %v4442_v63, %v3959_v5 }
 0x222   : > { %v4444_v24 = vpop.f32.mrf.mxu1  ;;  %v4484_v26 = vpop.f32.mrf.mxu0 }
 0x223   : > { %v4445_v6 = vadd.f32 %v4444_v24, %v4443_v21  ;;  %v4476_v21 = vadd.f32 %v5693_v11, %v5691_v22  ;;  %v1866_v24 = vadd.f32 %v4482_v17, %v1801_v16  ;;  %v4485_v63 = vadd.f32 %v4484_v26, %v4483_v23 }
 0x225   : > { %v1804_v0 = vadd.f32 %v4445_v6, %v3959_v5 }
 0x226   : > { %v4446_v27 = vpop.f32.mrf.mxu1 }
 0x227   : > { %v5699_v28 = vpop.f32.mrf.mxu0 }
 0x228   : > { %v4447_v29 = vpop.f32.mrf.mxu1 }
 0x229   : > { %v5701_v30 = vpop.f32.mrf.mxu0  ;;  %v4448_v19 = vadd.f32 %v4447_v29, %v4446_v27  ;;  %v1869_v27 = vadd.f32 %v4485_v63, %v1804_v0 }
 0x22a   : > { %v5703_v31 = vpop.f32.mrf.mxu1  ;;  %v4488_v22 = vadd.f32 %v5701_v30, %v5699_v28 }
 0x22b   : > { %v5705_v32 = vpop.f32.mrf.mxu0 }
 0x22c   : > { %v5707_v33 = vpop.f32.mrf.mxu1 }
 0x22d   : > { %v5709_v34 = vpop.f32.mrf.mxu0 }
 0x22e   : > { %v4452_v35 = vpop.f32.mrf.mxu1 }
 0x22f   : > { %v5711_v36 = vpop.f32.mrf.mxu0 }
 0x230   : > { %v4453_v37 = vpop.f32.mrf.mxu1 }
 0x231   : > { %v5713_v38 = vpop.f32.mrf.mxu0  ;;  %v4454_v8 = vadd.f32 %v4453_v37, %v4452_v35 }
 0x232   : > { %v4455_v39 = vpop.f32.mrf.mxu1 }
 0x233   : > { %v5715_v40 = vpop.f32.mrf.mxu0  ;;  %v1817_v29 = vadd.f32 %v4454_v8, %v3959_v5 }
 0x234   : > { %v4456_v42 = vpop.f32.mrf.mxu1 }
 0x235   : > { %v5717_v43 = vpop.f32.mrf.mxu0  ;;  %v4457_v35 = vadd.f32 %v4456_v42, %v4455_v39 }
 0x236   : > { %v4514_v44 = vpop.f32.mrf.mxu1 }
 0x237   : > { %v1820_v30 = vadd.f32 %v4457_v35, %v3959_v5 }
 0x238   : > { %v4515_v46 = vpop.f32.mrf.mxu1 }
 0x23a   : > { %v4517_v48 = vpop.f32.mrf.mxu1 }
 0x23c   : > { %v4518_v50 = vpop.f32.mrf.mxu1 }
 0x23d   : > { %v5719_v45 = vpop.f32.mrf.mxu0  ;;  %v4519_v11 = vadd.f32 %v4518_v50, %v4517_v48 }
 0x23e   : > { %v4520_v51 = vpop.f32.mrf.mxu1 }
 0x23f   : > { %v4555_v47 = vpop.f32.mrf.mxu0 }
 0x240   : > { %v4521_v53 = vpop.f32.mrf.mxu1  ;;  %v4556_v15 = vadd.f32 %v4555_v47, %v5719_v45 }
 0x241   : > { %v5721_v49 = vpop.f32.mrf.mxu0  ;;  %v4522_v58 = vadd.f32 %v4521_v53, %v4520_v51 }
 0x242   : > { %v4523_v55 = vpop.f32.mrf.mxu1 }
 0x243   : > { %v5723_v41 = vpop.f32.mrf.mxu0  ;;  %v1931_v4 = vadd.f32 %v4522_v58, %v1866_v24  ;;  %v4494_v58 = vadd.f32 %v5713_v38, %v5711_v36  ;;  %v4497_v38 = vadd.f32 %v5717_v43, %v5715_v40 }
 0x244   : > { %5901 = vst [vmem:[#allocation25_spill] sm:$0xff] %v5723_v41  ;;  %v4524_v59 = vpop.f32.mrf.mxu1  ;;  %v1809_v41 = vadd.f32 %v4448_v19, %v3959_v5 }
 0x245   : > { %v4560_v52 = vpop.f32.mrf.mxu0  ;;  %v4525_v18 = vadd.f32 %v4524_v59, %v4523_v55  ;;  %v1882_v28 = vadd.f32 %v4494_v58, %v1817_v29  ;;  %v1885_v55 = vadd.f32 %v4497_v38, %v1820_v30 }
 0x246   : > { %v4526_v62 = vpop.f32.mrf.mxu1  ;;  %v1874_v0 = vadd.f32 %v4488_v22, %v1809_v41 }
 0x247   : > { %v4561_v54 = vpop.f32.mrf.mxu0  ;;  %v1934_v39 = vadd.f32 %v4525_v18, %v1869_v27 }
 0x248   : > { %v4527_v2 = vpop.f32.mrf.mxu1 }
 0x249   : > { %v4563_v57 = vpop.f32.mrf.mxu0 }
 0x24a   : > { %v5732_v3 = vpop.f32.mrf.mxu1 }
 0x24b   : > { %v4564_v60 = vpop.f32.mrf.mxu0  ;;  %5904 = vst [vmem:[#allocation28_spill] sm:$0xff] %v5732_v3  ;;  %v1796_v3 = vadd.f32 %v4439_v9, %v3959_v5  ;;  %v4562_v9 = vadd.f32 %v4561_v54, %v4560_v52  ;;  %v5906_v41 = vld [vmem:[#allocation25_spill] sm:$0xff] }
 0x24c   : > { %v4530_v56 = vpop.f32.mrf.mxu1  ;;  %v4559_v45 = vadd.f32 %v5906_v41, %v5721_v49 }
 0x24d   : > { %v5725_v1 = vpop.f32.mrf.mxu0  ;;  %v1861_v23 = vadd.f32 %v4479_v20, %v1796_v3  ;;  %v1996_v42 = vadd.f32 %v4562_v9, %v1931_v4  ;;  %v4528_v3 = vadd.f32 %v4527_v2, %v4526_v62 }
 0x24e   : > { %5902 = vst [vmem:[#allocation26_spill] sm:$0xff] %v5725_v1  ;;  %v4532_v1 = vpop.f32.mrf.mxu1 }
 0x24f   : > { %v5730_v7 = vpop.f32.mrf.mxu0  ;;  %v1926_v48 = vadd.f32 %v4519_v11, %v1861_v23  ;;  %v1939_v59 = vadd.f32 %v4528_v3, %v1874_v0 }
 0x250   : > { %5903 = vst [vmem:[#allocation27_spill] sm:$0xff] %v5730_v7  ;;  %v4516_v7 = vadd.f32 %v4515_v46, %v4514_v44  ;;  %v4533_v14 = vpop.f32.mrf.mxu1 }
 0x251   : > { %v5734_v25 = vpop.f32.mrf.mxu0  ;;  %v4534_v26 = vadd.f32 %v4533_v14, %v4532_v1  ;;  %v1991_v40 = vadd.f32 %v4559_v45, %v1926_v48 }
 0x252   : > { %5905 = vst [vmem:[#allocation29_spill] sm:$0xff] %v5734_v25  ;;  %v1858_v25 = vadd.f32 %v4476_v21, %v1793_v61  ;;  %v4535_v37 = vpop.f32.mrf.mxu1  ;;  %v4451_v61 = vadd.f32 %v5707_v33, %v5703_v31  ;;  %v4565_v31 = vadd.f32 %v4564_v60, %v4563_v57  ;;  %v5907_v62 = vld [vmem:[#allocation28_spill] sm:$0xff] }
 0x253   : > { %v5736_v10 = vpop.f32.mrf.mxu0  ;;  %v1947_v47 = vadd.f32 %v4534_v26, %v1882_v28  ;;  %v4531_v57 = vadd.f32 %v4530_v56, %v5907_v62 }
 0x254   : > { %v1923_v16 = vadd.f32 %v4516_v7, %v1858_v25  ;;  %v4536_v13 = vpop.f32.mrf.mxu1  ;;  %v4491_v25 = vadd.f32 %v5709_v34, %v5705_v32  ;;  %v1812_v36 = vadd.f32 %v4451_v61, %v3959_v5  ;;  %v1999_v54 = vadd.f32 %v4565_v31, %v1934_v39 }
 0x255   : > { %v4572_v12 = vpop.f32.mrf.mxu0  ;;  %v4537_v53 = vadd.f32 %v4536_v13, %v4535_v37  ;;  %v5908_v49 = vld [vmem:[#allocation26_spill] sm:$0xff] }
 0x256   : > { %v4796_v46 = vpop.f32.mrf.mxu1  ;;  %v1988_v50 = vadd.f32 %v4556_v15, %v1923_v16  ;;  %v1877_v6 = vadd.f32 %v4491_v25, %v1812_v36 }
 0x257   : > { %v4573_v44 = vpop.f32.mrf.mxu0  ;;  %v2061_v33 = vadd.f32 %v4796_v46, %v1996_v42  ;;  %v5909_v7 = vld [vmem:[#allocation27_spill] sm:$0xff]  ;;  %v1950_v24 = vadd.f32 %v4537_v53, %v1885_v55 }
 0x258   : > { %v2052_v52 = vpop.f32.mrf.mxu1  ;;  %v4574_v60 = vadd.f32 %v4573_v44, %v4572_v12  ;;  %v4568_v17 = vadd.f32 %v5909_v7, %v5908_v49  ;;  %v1942_v56 = vadd.f32 %v4531_v57, %v1877_v6  ;;  %v5062_v57 = vld [vmem:[#allocation10 + $0x138] sm:$0xff]  }
 0x259   : > { %v4575_v51 = vpop.f32.mrf.mxu0  ;;  %v2085_v32 = vmax.f32 %v2061_v33, 0.0  ;;  %v2053_v34 = vadd.f32 %v2052_v52, %v1988_v50  ;;  %v5910_v37 = vld [vmem:[#allocation29_spill] sm:$0xff] }
 0x25a   : > { %v4797_v1 = vpop.f32.mrf.mxu1  ;;  %v2012_v21 = vadd.f32 %v4574_v60, %v1947_v47  ;;  %v2004_v18 = vadd.f32 %v4568_v17, %v1939_v59  ;;  %v4571_v22 = vadd.f32 %v5736_v10, %v5910_v37  ;;  %v5080_v37 = vld [vmem:[#allocation10 + $0x1b0] sm:$0xff]  }
 0x25b   : > { %2113 = vst [vmem:[#allocation2 + $0x31] sm:$0xff] %v2085_v32  ;;  %v2083_v2 = vmax.f32 %v2053_v34, 0.0  ;;  %v2064_v5 = vadd.f32 %v4797_v1, %v1999_v54  ;;  %v4346_v43 = vpack.c.bf16 %v2085_v32, %v2085_v32  ;;  %v4576_v19 = vpop.f32.mrf.mxu0 }
 0x25c   : > { %v2055_v8 = vpop.f32.mrf.mxu1  ;;  %v4577_v20 = vadd.f32 %v4576_v19, %v4575_v51  ;;  %v2007_v26 = vadd.f32 %v4571_v22, %v1942_v56  ;;  %v5070_v19 = vld [vmem:[#allocation10 + $0x130] sm:$0xff]  }
 0x25d   : > { %2111 = vst [vmem:[#allocation2 + $0x11] sm:$0xff] %v2083_v2  ;;  %v2086_v63 = vmax.f32 %v2064_v5, 0.0  ;;  %v2056_v14 = vadd.f32 %v2055_v8, %v1991_v40  ;;  %v4344_v4 = vpack.c.bf16 %v2083_v2, %v2083_v2  ;;  %2210 = vst [vmem:[#allocation3 + $0x70] sm:$0xf] %v4346_v43  ;;  %v5069_v2 = vld [vmem:[#allocation10 + $0x170] sm:$0xff]  }
 0x25e   : > { %2496 = vst [vmem:[#allocation3 + $0x40] sm:$0xf] %v4346_v43  ;;  %2353 = vst [vmem:[#allocation3 + $0x58] sm:$0xf] %v4346_v43  ;;  %v4800_v12 = vpop.f32.mrf.mxu1  ;;  %v2015_v23 = vadd.f32 %v4577_v20, %v1950_v24  ;;  %v5077_v20 = vld [vmem:[#allocation10 + $0x1f0] sm:$0xff]  }
 0x25f   : > { %2114 = vst [vmem:[#allocation2 + $0x41] sm:$0xff] %v2086_v63  ;;  %v2084_v27 = vmax.f32 %v2056_v14, 0.0  ;;  %v2077_v29 = vadd.f32 %v4800_v12, %v2012_v21  ;;  %2208 = vst [vmem:[#allocation3 + $0x28] sm:$0xf] %v4344_v4  ;;  %v4347_v35 = vpack.c.bf16 %v2086_v63, %v2086_v63  ;;  %v5074_v63 = vld [vmem:[#allocation10 + $0x1b8] sm:$0xff]  }
 0x260   : > { %2351 = vst [vmem:[#allocation3 + $0x10] sm:$0xf] %v4344_v4  ;;  %v2068_v16 = vpop.f32.mrf.mxu1 }
 0x261   : > { %2112 = vst [vmem:[#allocation2 + $0x21] sm:$0xff] %v2084_v27  ;;  %v2089_v11 = vmax.f32 %v2077_v29, 0.0  ;;  %v2069_v9 = vadd.f32 %v2068_v16, %v2004_v18  ;;  %v4345_v61 = vpack.c.bf16 %v2084_v27, %v2084_v27  ;;  %2211 = vst [vmem:[#allocation3 + $0x94] sm:$0xf] %v4347_v35  ;;  %v5075_v18 = vld [vmem:[#allocation10 + $0x168] sm:$0xff]   ;;  %v5081_v16 = vld [vmem:[#allocation10 + $0x160] sm:$0xff]  }
 0x262   : > { %2354 = vst [vmem:[#allocation3 + $0x7c] sm:$0xf] %v4347_v35  ;;  %2497 = vst [vmem:[#allocation3 + $0x64] sm:$0xf] %v4347_v35  ;;  %v4801_v58 = vpop.f32.mrf.mxu1  ;;  %v2122_v44 = vld [vmem:[#allocation2 + $0x30] sm:$0xff]  ;;  %v5076_v29 = vld [vmem:[#allocation10 + $0x128] sm:$0xff]  }
 0x263   : > { %v2218_v13 = vld [vmem:[#allocation2 + $0x32] sm:$0xff]  ;;  %2117 = vst [vmem:[#allocation2 + $0x71] sm:$0xff] %v2089_v11  ;;  %v2087_v0 = vmax.f32 %v2069_v9, 0.0  ;;  %v2080_v15 = vadd.f32 %v4801_v58, %v2015_v23  ;;  %v4338_v39 = vpack.c.bf16 %v2122_v44, %v2122_v44  ;;  %2209 = vst [vmem:[#allocation3 + $0x4c] sm:$0xf] %v4345_v61  ;;  %v4350_v30 = vpack.c.bf16 %v2089_v11, %v2089_v11  ;;  %v5088_v58 = vld [vmem:[#allocation10 + $0x158] sm:$0xff]  }
 0x264   : > { %v4354_v42 = vpack.c.bf16 %v2218_v13, %v2218_v13  ;;  %2352 = vst [vmem:[#allocation3 + $0x34] sm:$0xf] %v4345_v61  ;;  %2495 = vst [vmem:[#allocation3 + $0x1c] sm:$0xf] %v4345_v61  ;;  %v2071_v10 = vpop.f32.mrf.mxu1  ;;  %v2120_v25 = vld [vmem:[#allocation2 + $0x10] sm:$0xff]  ;;  %v5084_v11 = vld [vmem:[#allocation10 + $0x1e8] sm:$0xff]  }
 0x265   : > { %v2216_v28 = vld [vmem:[#allocation2 + $0x12] sm:$0xff]  ;;  %2115 = vst [vmem:[#allocation2 + $0x51] sm:$0xff] %v2087_v0  ;;  %v2090_v3 = vmax.f32 %v2080_v15, 0.0  ;;  %v2072_v46 = vadd.f32 %v2071_v10, %v2007_v26  ;;  %v4336_v48 = vpack.c.bf16 %v2120_v25, %v2120_v25  ;;  %2162 = vst [vmem:[#allocation3 + $0x6c] sm:$0xf] %v4338_v39  ;;  %v4348_v50 = vpack.c.bf16 %v2087_v0, %v2087_v0  ;;  %v5089_v13 = vld [vmem:[#allocation10 + $0x118] sm:$0xff]  }
 0x266   : > { %v4352_v31 = vpack.c.bf16 %v2216_v28, %v2216_v28  ;;  %2258 = vst [vmem:[#allocation3 + $0x74] sm:$0xf] %v4354_v42  ;;  %2305 = vst [vmem:[#allocation3 + $0x54] sm:$0xf] %v4338_v39  ;;  %v2266_v33 = vld [vmem:[#allocation2 + $0x40] sm:$0xff]  ;;  %v5083_v23 = vld [vmem:[#allocation10 + $0x120] sm:$0xff]  }
 0x267   : > { %2448 = vst [vmem:[#allocation3 + $0x3c] sm:$0xf] %v4338_v39  ;;  %2401 = vst [vmem:[#allocation3 + $0x5c] sm:$0xf] %v4354_v42  ;;  %v2219_v36 = vld [vmem:[#allocation2 + $0x42] sm:$0xff]  ;;  %v2088_v38 = vmax.f32 %v2072_v46, 0.0  ;;  %v4362_v41 = vpack.c.bf16 %v2266_v33, %v2266_v33  ;;  %v4374_v47 = vpack.c.bf16 %v2090_v3, %v2090_v3 }
 0x268   : > { %2544 = vst [vmem:[#allocation3 + $0x44] sm:$0xf] %v4354_v42  ;;  %2214 = vst [vmem:[#allocation3 + $0x100] sm:$0xf] %v4350_v30  ;;  %v4355_v45 = vpack.c.bf16 %v2219_v36, %v2219_v36  ;;  %v2121_v51 = vld [vmem:[#allocation2 + $0x20] sm:$0xff]  ;;  %v5087_v61 = vld [vmem:[#allocation10 + $0x1a8] sm:$0xff]  }
 0x269   : > { %2500 = vst [vmem:[#allocation3 + $0xd0] sm:$0xf] %v4350_v30  ;;  %2357 = vst [vmem:[#allocation3 + $0xe8] sm:$0xf] %v4350_v30  ;;  %v2217_v52 = vld [vmem:[#allocation2 + $0x22] sm:$0xff]  ;;  %v4337_v53 = vpack.c.bf16 %v2121_v51, %v2121_v51  ;;  %v4349_v34 = vpack.c.bf16 %v2088_v38, %v2088_v38  ;;  %v5090_v0 = vld [vmem:[#allocation10 + $0x1e0] sm:$0xff]  }
 0x26a   : > { %2118 = vst [vmem:[#allocation2 + $0x81] sm:$0xff] %v2090_v3  ;;  %2160 = vst [vmem:[#allocation3 + $0x24] sm:$0xf] %v4336_v48  ;;  %v4353_v32 = vpack.c.bf16 %v2217_v52, %v2217_v52  ;;  %v2126_v54 = vld [vmem:[#allocation2 + $0x70] sm:$0xff]  ;;  %v5059_v6 = vld [vmem:[#allocation3 + $0x4] ss:$36 sps:$4 sm:$0xff]  }
 0x26b   : > { %2256 = vst [vmem:[#allocation3 + $0x2c] sm:$0xf] %v4352_v31  ;;  %2303 = vst [vmem:[#allocation3 + $0xc] sm:$0xf] %v4336_v48  ;;  %v2222_v55 = vld [vmem:[#allocation2 + $0x72] sm:$0xff]  ;;  %v4342_v59 = vpack.c.bf16 %v2126_v54, %v2126_v54  ;;  %3390 = vmatprep.mubr.bf16.mxu0 %v5059_v6  ;;  %v5094_v28 = vld [vmem:[#allocation10 + $0x150] sm:$0xff]  }
 0x26c   : > { %2399 = vst [vmem:[#allocation3 + $0x14] sm:$0xf] %v4352_v31  ;;  %2212 = vst [vmem:[#allocation3 + $0xb8] sm:$0xf] %v4348_v50  ;;  %v4358_v62 = vpack.c.bf16 %v2222_v55, %v2222_v55  ;;  %v2124_v60 = vld [vmem:[#allocation2 + $0x50] sm:$0xff]  ;;  %v5097_v46 = vld [vmem:[#allocation10 + $0x1d8] sm:$0xff]  }
 0x26d   : > { %2498 = vst [vmem:[#allocation3 + $0x88] sm:$0xf] %v4348_v50  ;;  %2355 = vst [vmem:[#allocation3 + $0xa0] sm:$0xf] %v4348_v50  ;;  %v2220_v1 = vld [vmem:[#allocation2 + $0x52] sm:$0xff]  ;;  %v4340_v5 = vpack.c.bf16 %v2124_v60, %v2124_v60  ;;  %v5096_v48 = vld [vmem:[#allocation10 + $0x110] sm:$0xff]  }
 0x26e   : > { %2116 = vst [vmem:[#allocation2 + $0x61] sm:$0xff] %v2088_v38  ;;  %2306 = vst [vmem:[#allocation3 + $0x78] sm:$0xf] %v4362_v41  ;;  %v4356_v40 = vpack.c.bf16 %v2220_v1, %v2220_v1  ;;  %v5064_v24 = vld [vmem:[#allocation3 + $0x4c] ss:$36 sps:$4 sm:$0xff]   ;;  %v5101_v33 = vld [vmem:[#allocation10 + $0x148] sm:$0xff]  }
 0x26f   : > { %2163 = vst [vmem:[#allocation3 + $0x90] sm:$0xf] %v4362_v41  ;;  %2259 = vst [vmem:[#allocation3 + $0x98] sm:$0xf] %v4355_v45  ;;  %v2566_v35 = vld [vmem:[#allocation3 + $0x6c] sm:$0xff]  ;;  %v5103_v38 = vld [vmem:[#allocation10 + $0x1d0] sm:$0xff]  }
 0x270   : > { %2402 = vst [vmem:[#allocation3 + $0x80] sm:$0xf] %v4355_v45  ;;  %2449 = vst [vmem:[#allocation3 + $0x60] sm:$0xf] %v4362_v41  ;;  %v5093_v25 = vld [vmem:[#allocation10 + $0x1a0] sm:$0xff]   ;;  %v5100_v31 = vld [vmem:[#allocation10 + $0x198] sm:$0xff]  }
 0x271   : > { %2358 = vst [vmem:[#allocation3 + $0x10c] sm:$0xf] %v4374_v47  ;;  %2501 = vst [vmem:[#allocation3 + $0xf4] sm:$0xf] %v4374_v47  ;;  %v5057_v43 = vld [vmem:[#allocation3] ss:$36 sps:$4 sm:$0xff]  }
 0x272   : > { %2545 = vst [vmem:[#allocation3 + $0x68] sm:$0xf] %v4355_v45  ;;  %2161 = vst [vmem:[#allocation3 + $0x48] sm:$0xf] %v4337_v53  ;;  %v2270_v49 = vld [vmem:[#allocation2 + $0x80] sm:$0xff]  ;;  %3391 = vmatmul.mubr.bf16.vlgmr.msra.gmra.mxu0 %v5057_v43  ;;  %v5102_v47 = vld [vmem:[#allocation10 + $0x108] sm:$0xff]  }
 0x273   : > { %2304 = vst [vmem:[#allocation3 + $0x30] sm:$0xf] %v4337_v53  ;;  %2257 = vst [vmem:[#allocation3 + $0x50] sm:$0xf] %v4353_v32  ;;  %v4366_v17 = vpack.c.bf16 %v2270_v49, %v2270_v49  ;;  %4671 = vmatpush3.bf16.msra.mxu0 %v5062_v57  ;;  %v5066_v4 = vld [vmem:[#allocation3 + $0x8] ss:$36 sps:$4 sm:$0xff]   ;;  %3398 = vmatprep.mubr.bf16.mxu0 %v5064_v24 }
 0x274   : > { %2213 = vst [vmem:[#allocation3 + $0xdc] sm:$0xf] %v4349_v34  ;;  %2400 = vst [vmem:[#allocation3 + $0x38] sm:$0xf] %v4353_v32  ;;  %4672 = vmatprep.subr.bf16.mxu0 %v5069_v2  ;;  %v5078_v9 = vld [vmem:[#allocation3 + $0x94] ss:$36 sps:$4 sm:$0xff]  }
 0x275   : > { %2447 = vst [vmem:[#allocation3 + $0x18] sm:$0xf] %v4337_v53  ;;  %2356 = vst [vmem:[#allocation3 + $0xc4] sm:$0xf] %v4349_v34  ;;  %v2268_v7 = vld [vmem:[#allocation2 + $0x60] sm:$0xff]  ;;  %v5108_v53 = vld [vmem:[#allocation10 + $0x140] sm:$0xff]  }
 0x276   : > { %2499 = vst [vmem:[#allocation3 + $0xac] sm:$0xf] %v4349_v34  ;;  %2543 = vst [vmem:[#allocation3 + $0x20] sm:$0xf] %v4353_v32  ;;  %v4364_v8 = vpack.c.bf16 %v2268_v7, %v2268_v7  ;;  %v2221_v21 = vld [vmem:[#allocation2 + $0x62] sm:$0xff]  ;;  %v2571_v39 = vld [vmem:[#allocation3 + $0x90] sm:$0xff] }
 0x277   : > { %2166 = vst [vmem:[#allocation3 + $0xfc] sm:$0xf] %v4342_v59  ;;  %2262 = vst [vmem:[#allocation3 + $0x104] sm:$0xf] %v4358_v62  ;;  %v4357_v14 = vpack.c.bf16 %v2221_v21, %v2221_v21  ;;  %v5072_v27 = vld [vmem:[#allocation3 + $0x54] ss:$36 sps:$4 sm:$0xff]   ;;  %4673 = vmatpush3.bf16.msra.mxu0 %v5070_v19 }
 0x278   : > { %2309 = vst [vmem:[#allocation3 + $0xe4] sm:$0xf] %v4342_v59  ;;  %2452 = vst [vmem:[#allocation3 + $0xcc] sm:$0xf] %v4342_v59  ;;  %4674 = vmatprep.subr.bf16.mxu0 %v5075_v18  ;;  %v2366_v42 = vld [vmem:[#allocation2 + $0x82] sm:$0xff]  ;;  %v5111_v34 = vld [vmem:[#allocation10 + $0x1c8] sm:$0xff]  }
 0x279   : > { %2405 = vst [vmem:[#allocation3 + $0xec] sm:$0xf] %v4358_v62  ;;  %2548 = vst [vmem:[#allocation3 + $0xd4] sm:$0xf] %v4358_v62  ;;  %v2561_v12 = vld [vmem:[#allocation3 + $0x48] sm:$0xff]  ;;  %v4382_v30 = vpack.c.bf16 %v2366_v42, %v2366_v42  ;;  %v5107_v52 = vld [vmem:[#allocation10 + $0x190] sm:$0xff]  }
 0x27a   : > { %2164 = vst [vmem:[#allocation3 + $0xb4] sm:$0xf] %v4340_v5  ;;  %2260 = vst [vmem:[#allocation3 + $0xbc] sm:$0xf] %v4356_v40  ;;  %v5068_v56 = vld [vmem:[#allocation3 + $0xc] ss:$36 sps:$4 sm:$0xff]   ;;  %v4150_v22 = vcombine.low %v2561_v12, %v2566_v35 }
 0x27b   : > { %2307 = vst [vmem:[#allocation3 + $0x9c] sm:$0xf] %v4340_v5  ;;  %2450 = vst [vmem:[#allocation3 + $0x84] sm:$0xf] %v4340_v5  ;;  %3455 = vmatprep.mubr.bf16.mxu1 %v5068_v56  ;;  %4675 = vmatpush3.bf16.msra.mxu0 %v5076_v29  ;;  %v5082_v44 = vld [vmem:[#allocation3 + $0x50] ss:$36 sps:$4 sm:$0xff]  }
 0x27c   : > { %2403 = vst [vmem:[#allocation3 + $0xa4] sm:$0xf] %v4356_v40  ;;  %2546 = vst [vmem:[#allocation3 + $0x8c] sm:$0xf] %v4356_v40  ;;  %3456 = vmatmul.mubr.bf16.vlgmr.msra.gmra.mxu1 %v5066_v4  ;;  %3399 = vmatmul.mubr.bf16.gmra.mxu0 %v4150_v22  ;;  %v5091_v3 = vld [vmem:[#allocation3 + $0xdc] ss:$36 sps:$4 sm:$0xff]  }
 0x27d   : > { %2310 = vst [vmem:[#allocation3 + $0x108] sm:$0xf] %v4366_v17  ;;  %2453 = vst [vmem:[#allocation3 + $0xf0] sm:$0xf] %v4366_v17  ;;  %3463 = vmatprep.mubr.bf16.mxu1 %v5072_v27  ;;  %4711 = vmatpush3.bf16.msra.mxu1 %v5074_v63  ;;  %v5106_v32 = vld [vmem:[#allocation3 + $0x14] ss:$36 sps:$4 sm:$0xff]  }
 0x27e   : > { %2308 = vst [vmem:[#allocation3 + $0xc0] sm:$0xf] %v4364_v8  ;;  %2165 = vst [vmem:[#allocation3 + $0xd8] sm:$0xf] %v4364_v8  ;;  %4712 = vmatprep.subr.bf16.mxu1 %v5077_v20  ;;  %3406 = vmatprep.mubr.bf16.mxu0 %v5078_v9  ;;  %v2586_v45 = vld [vmem:[#allocation3 + $0xfc] sm:$0xff]  ;;  %v5110_v54 = vld [vmem:[#allocation10 + $0x100] sm:$0xff]  }
 0x27f   : > { %2451 = vst [vmem:[#allocation3 + $0xa8] sm:$0xf] %v4364_v8  ;;  %2261 = vst [vmem:[#allocation3 + $0xe0] sm:$0xf] %v4357_v14  ;;  %4676 = vmatprep.subr.bf16.mxu0 %v5081_v16  ;;  %v5112_v55 = vld [vmem:[#allocation10 + $0x188] sm:$0xff]   ;;  %v5116_v62 = vld [vmem:[#allocation10 + $0x238] sm:$0xff]  }
 0x280   : > { %2404 = vst [vmem:[#allocation3 + $0xc8] sm:$0xf] %v4357_v14  ;;  %2547 = vst [vmem:[#allocation3 + $0xb0] sm:$0xf] %v4357_v14  ;;  %4677 = vmatpush3.bf16.msra.mxu0 %v5083_v23  ;;  %v5117_v57 = vld [vmem:[#allocation10 + $0x1c0] sm:$0xff]   ;;  %v5121_v5 = vld [vmem:[#allocation10 + $0x230] sm:$0xff]  }
 0x281   : > { %4713 = vmatpush3.bf16.msra.mxu1 %v5080_v37  ;;  %v2576_v26 = vld [vmem:[#allocation3 + $0xb4] sm:$0xff]  ;;  %4678 = vmatprep.subr.bf16.mxu0 %v5088_v58  ;;  %2406 = vst [vmem:[#allocation3 + $0x110] sm:$0xf] %v4382_v30  ;;  %2549 = vst [vmem:[#allocation3 + $0xf8] sm:$0xf] %v4382_v30  ;;  %v2568_v49 = vld [vmem:[#allocation3 + $0x7c] sm:$0xff] }
 0x282   : > { %4714 = vmatprep.subr.bf16.mxu1 %v5084_v11  ;;  %v4159_v10 = vcombine.low %v2571_v39, %v2576_v26  ;;  %v5095_v36 = vld [vmem:[#allocation3 + $0x98] ss:$36 sps:$4 sm:$0xff]   ;;  %v5104_v1 = vld [vmem:[#allocation3 + $0x10] ss:$36 sps:$4 sm:$0xff]   ;;  %v5122_v7 = vld [vmem:[#allocation3 + $0x64] ss:$36 sps:$4 sm:$0xff]  }
 0x283   : > { %v5115_v60 = vld [vmem:[#allocation3 + $0x1c] ss:$36 sps:$4 sm:$0xff]   ;;  %v5120_v2 = vld [vmem:[#allocation10 + $0x180] sm:$0xff]   ;;  %v5131_v24 = vld [vmem:[#allocation10 + $0x218] sm:$0xff]  }
 0x284   : > { %3464 = vmatmul.mubr.bf16.gmra.mxu1 %v5082_v44  ;;  %3407 = vmatmul.mubr.bf16.gmra.mxu0 %v4159_v10  ;;  %v5098_v41 = vld [vmem:[#allocation3 + $0xe4] ss:$36 sps:$4 sm:$0xff]   ;;  %v5118_v40 = vld [vmem:[#allocation3 + $0x5c] ss:$36 sps:$4 sm:$0xff]   ;;  %v5127_v8 = vld [vmem:[#allocation10 + $0x220] sm:$0xff]  }
 0x285   : > { %v5085_v15 = vld [vmem:[#allocation3 + $0x9c] ss:$36 sps:$4 sm:$0xff]   ;;  %4715 = vmatpush3.bf16.msra.mxu1 %v5087_v61  ;;  %4679 = vmatpush3.bf16.msra.mxu0 %v5089_v13  ;;  %v5129_v4 = vld [vmem:[#allocation3 + $0xac] ss:$36 sps:$4 sm:$0xff]   ;;  %v5136_v35 = vld [vmem:[#allocation3 + $0xf4] ss:$36 sps:$4 sm:$0xff]  }
 0x286   : > { %3471 = vmatprep.mubr.bf16.mxu1 %v5085_v15  ;;  %4716 = vmatprep.subr.bf16.mxu1 %v5090_v0  ;;  %v2581_v50 = vld [vmem:[#allocation3 + $0xd8] sm:$0xff]  ;;  %v5109_v59 = vld [vmem:[#allocation3 + $0xe0] ss:$36 sps:$4 sm:$0xff]   ;;  %v5135_v29 = vld [vmem:[#allocation3 + $0xa8] ss:$36 sps:$4 sm:$0xff]  }
 0x287   : > { %3414 = vmatprep.mubr.bf16.mxu0 %v5091_v3  ;;  %4680 = vmatprep.subr.bf16.mxu0 %v5094_v28  ;;  %v4168_v51 = vcombine.low %v2581_v50, %v2586_v45  ;;  %v5124_v43 = vld [vmem:[#allocation10 + $0x228] sm:$0xff]   ;;  %v5125_v21 = vld [vmem:[#allocation3 + $0xa4] ss:$36 sps:$4 sm:$0xff]   ;;  %v5141_v22 = vld [vmem:[#allocation10 + $0x200] sm:$0xff]  }
 0x288   : > { %v5113_v6 = vld [vmem:[#allocation3 + $0x18] ss:$36 sps:$4 sm:$0xff]   ;;  %v2578_v63 = vld [vmem:[#allocation3 + $0xc4] sm:$0xff]  ;;  %v5132_v20 = vld [vmem:[#allocation3 + $0xec] ss:$36 sps:$4 sm:$0xff]  }
 0x289   : > { %4717 = vmatpush3.bf16.msra.mxu1 %v5093_v25  ;;  %4681 = vmatpush3.bf16.msra.mxu0 %v5096_v48  ;;  %v2563_v17 = vld [vmem:[#allocation3 + $0x58] sm:$0xff]  ;;  %v5128_v14 = vld [vmem:[#allocation3 + $0x60] ss:$36 sps:$4 sm:$0xff]   ;;  %v5139_v37 = vld [vmem:[#allocation3 + $0xe8] ss:$36 sps:$4 sm:$0xff]  }
 0x28a   : > { %4718 = vmatprep.subr.bf16.mxu1 %v5097_v46  ;;  %4682 = vmatprep.subr.bf16.mxu0 %v5101_v33  ;;  %v4154_v19 = vcombine.low %v2563_v17, %v2568_v49  ;;  %v2573_v56 = vld [vmem:[#allocation3 + $0xa0] sm:$0xff]  ;;  %v5138_v27 = vld [vmem:[#allocation10 + $0x208] sm:$0xff]   ;;  %v5142_v11 = vld [vmem:[#allocation3 + $0xf0] ss:$36 sps:$4 sm:$0xff]  }
 0x28b   : > { %v4163_v12 = vcombine.low %v2573_v56, %v2578_v63  ;;  %v5134_v18 = vld [vmem:[#allocation10 + $0x210] sm:$0xff]   ;;  %v5143_v9 = vld [vmem:[#allocation3 + $0x68] ss:$36 sps:$4 sm:$0xff]   ;;  %v5144_v23 = vld [vmem:[#allocation3 + $0xb0] ss:$36 sps:$4 sm:$0xff]  }
 0x28c   : > { %3472 = vmatmul.mubr.bf16.gmra.mxu1 %v5095_v36  ;;  %3415 = vmatmul.mubr.bf16.gmra.mxu0 %v4168_v51  ;;  %v5140_v16 = vld [vmem:[#allocation3 + $0x20] ss:$36 sps:$4 sm:$0xff]   ;;  %v5145_v61 = vld [vmem:[#allocation3 + $0xf8] ss:$36 sps:$4 sm:$0xff]  }
 0x28d   : > { %3479 = vmatprep.mubr.bf16.mxu1 %v5098_v41  ;;  %4719 = vmatpush3.bf16.msra.mxu1 %v5100_v31 }
 0x28e   : > { %4720 = vmatprep.subr.bf16.mxu1 %v5103_v38  ;;  %4683 = vmatpush3.bf16.msra.mxu0 %v5102_v47 }
 0x28f   : > { %3520 = vmatprep.mubr.bf16.mxu0 %v5106_v32  ;;  %4684 = vmatprep.subr.bf16.mxu0 %v5108_v53 }
 0x291   : > { %4721 = vmatpush3.bf16.msra.mxu1 %v5107_v52 }
 0x292   : > { %4722 = vmatprep.subr.bf16.mxu1 %v5111_v34  ;;  %4685 = vmatpush3.bf16.msra.mxu0 %v5110_v54 }
 0x293   : > { %4802 = vmatprep.subr.bf16.mxu0 %v5116_v62 }
 0x294   : > { %3480 = vmatmul.mubr.bf16.gmra.mxu1 %v5109_v59 }
 0x295   : > { %4723 = vmatpush3.bf16.msra.mxu1 %v5112_v55  ;;  %3585 = vmatprep.mubr.bf16.mxu1 %v5115_v60 }
 0x296   : > { %4724 = vmatprep.subr.bf16.mxu1 %v5117_v57  ;;  %3521 = vmatmul.mubr.bf16.vlgmr.msra.gmra.mxu0 %v5104_v1 }
 0x297   : > { %4803 = vmatpush3.bf16.msra.mxu0 %v5116_v62  ;;  %3528 = vmatprep.mubr.bf16.mxu0 %v5118_v40 }
 0x298   : > { %4804 = vmatprep.subr.bf16.mxu0 %v5121_v5 }
 0x299   : > { %4725 = vmatpush3.bf16.msra.mxu1 %v5120_v2 }
 0x29b   : > { %4805 = vmatpush3.bf16.msra.mxu0 %v5121_v5 }
 0x29c   : > { %3586 = vmatmul.mubr.bf16.vlgmr.msra.gmra.mxu1 %v5113_v6  ;;  %4806 = vmatprep.subr.bf16.mxu0 %v5124_v43 }
 0x29d   : > { %3593 = vmatprep.mubr.bf16.mxu1 %v5122_v7 }
 0x29e   : > { %3529 = vmatmul.mubr.bf16.gmra.mxu0 %v4154_v19 }
 0x29f   : > { %4807 = vmatpush3.bf16.msra.mxu0 %v5124_v43  ;;  %3536 = vmatprep.mubr.bf16.mxu0 %v5125_v21 }
 0x2a0   : > { %4808 = vmatprep.subr.bf16.mxu0 %v5127_v8 }
 0x2a3   : > { %4809 = vmatpush3.bf16.msra.mxu0 %v5127_v8 }
 0x2a4   : > { %3594 = vmatmul.mubr.bf16.gmra.mxu1 %v5128_v14  ;;  %4810 = vmatprep.subr.bf16.mxu0 %v5131_v24 }
 0x2a5   : > { %3601 = vmatprep.mubr.bf16.mxu1 %v5129_v4 }
 0x2a6   : > { %3537 = vmatmul.mubr.bf16.gmra.mxu0 %v4163_v12 }
 0x2a7   : > { %4811 = vmatpush3.bf16.msra.mxu0 %v5131_v24  ;;  %3544 = vmatprep.mubr.bf16.mxu0 %v5132_v20 }
 0x2a8   : > { %4812 = vmatprep.subr.bf16.mxu0 %v5134_v18 }
 0x2ab   : > { %4813 = vmatpush3.bf16.msra.mxu0 %v5134_v18 }
 0x2ac   : > { %3602 = vmatmul.mubr.bf16.gmra.mxu1 %v5135_v29  ;;  %4814 = vmatprep.subr.bf16.mxu0 %v5138_v27 }
 0x2ad   : > { %3609 = vmatprep.mubr.bf16.mxu1 %v5136_v35 }
 0x2ae   : > { %3545 = vmatmul.mubr.bf16.gmra.mxu0 %v5139_v37 }
 0x2af   : > { %4815 = vmatpush3.bf16.msra.mxu0 %v5138_v27  ;;  %4818 = vmatprep.mubr.bf16.mxu0 %v5140_v16  ;;  %v4140_v27 = vld [vmem:[%s5861_s6] ss:$0 sm:$0xff] }
 0x2b0   : > { %4816 = vmatprep.subr.bf16.mxu0 %v5141_v22 }
 0x2b3   : > { %4817 = vmatpush3.bf16.msra.mxu0 %v5141_v22 }
 0x2b4   : > { %3610 = vmatmul.mubr.bf16.gmra.mxu1 %v5142_v11 }
 0x2b6   : > { %4819 = vmatmul.mubr.bf16.vlgmr.msra.gmra.mxu0 %v5143_v9 }
 0x2b7   : > { %4822 = vmatprep.mubr.bf16.mxu0 %v5144_v23 }
 0x2be   : > { %4823 = vmatmul.mubr.bf16.gmra.mxu0 %v5145_v61 }
 0x332   : > { %v4606_v58 = vpop.f32.mrf.mxu0 }
 0x334   : > { %v4607_v26 = vpop.f32.mrf.mxu0 }
 0x335   : > { %v4608_v12 = vadd.f32 %v4607_v26, %v4606_v58 }
 0x336   : > { %v4609_v44 = vpop.f32.mrf.mxu0 }
 0x337   : > { %v3393_v61 = vadd.f32 %v4608_v12, %v4140_v27 }
 0x338   : > { %v4610_v0 = vpop.f32.mrf.mxu0 }
 0x339   : > { %v4611_v29 = vadd.f32 %v4610_v0, %v4609_v44 }
 0x33b   : > { %v3396_v26 = vadd.f32 %v4611_v29, %v4140_v27 }
 0x33c   : > { %v4646_v13 = vpop.f32.mrf.mxu1  ;;  %v4612_v39 = vpop.f32.mrf.mxu0 }
 0x33e   : > { %v4647_v15 = vpop.f32.mrf.mxu1  ;;  %v4613_v10 = vpop.f32.mrf.mxu0 }
 0x33f   : > { %v4614_v18 = vadd.f32 %v4613_v10, %v4612_v39  ;;  %v4648_v16 = vadd.f32 %v4647_v15, %v4646_v13 }
 0x340   : > { %v4649_v42 = vpop.f32.mrf.mxu1  ;;  %v4615_v28 = vpop.f32.mrf.mxu0 }
 0x342   : > { %v4650_v25 = vpop.f32.mrf.mxu1  ;;  %v4616_v3 = vpop.f32.mrf.mxu0 }
 0x343   : > { %v4651_v11 = vadd.f32 %v4650_v25, %v4649_v42  ;;  %v4617_v9 = vadd.f32 %v4616_v3, %v4615_v28 }
 0x344   : > { %v4652_v30 = vpop.f32.mrf.mxu1  ;;  %v4618_v48 = vpop.f32.mrf.mxu0 }
 0x345   : > { %v3461_v13 = vadd.f32 %v4651_v11, %v3396_v26  ;;  %v3404_v15 = vadd.f32 %v4617_v9, %v4140_v27 }
 0x346   : > { %v4653_v46 = vpop.f32.mrf.mxu1  ;;  %v4619_v33 = vpop.f32.mrf.mxu0 }
 0x347   : > { %v4654_v37 = vadd.f32 %v4653_v46, %v4652_v30  ;;  %v4620_v39 = vadd.f32 %v4619_v33, %v4618_v48  ;;  %v3458_v46 = vadd.f32 %v4648_v16, %v3393_v61 }
 0x348   : > { %v4655_v31 = vpop.f32.mrf.mxu1  ;;  %v4621_v36 = vpop.f32.mrf.mxu0 }
 0x34a   : > { %v4656_v50 = vpop.f32.mrf.mxu1  ;;  %v4622_v41 = vpop.f32.mrf.mxu0 }
 0x34b   : > { %v4657_v10 = vadd.f32 %v4656_v50, %v4655_v31 }
 0x34c   : > { %v4658_v38 = vpop.f32.mrf.mxu1  ;;  %v4624_v47 = vpop.f32.mrf.mxu0 }
 0x34d   : > { %v3469_v48 = vadd.f32 %v4657_v10, %v3404_v15 }
 0x34e   : > { %v4659_v45 = vpop.f32.mrf.mxu1  ;;  %v4625_v52 = vpop.f32.mrf.mxu0 }
 0x34f   : > { %v4626_v44 = vadd.f32 %v4625_v52, %v4624_v47  ;;  %v4660_v42 = vadd.f32 %v4659_v45, %v4658_v38 }
 0x350   : > { %v5760_v51 = vpop.f32.mrf.mxu1  ;;  %v5764_v32 = vpop.f32.mrf.mxu0 }
 0x351   : > { %5911 = vst [vmem:[#allocation25_spill] sm:$0xff] %v5760_v51 }
 0x352   : > { %v5762_v53 = vpop.f32.mrf.mxu1  ;;  %v5766_v54 = vpop.f32.mrf.mxu0 }
 0x353   : > { %5912 = vst [vmem:[#allocation28_spill] sm:$0xff] %v5762_v53  ;;  %v3401_v53 = vadd.f32 %v4614_v18, %v4140_v27  ;;  %v3409_v18 = vadd.f32 %v4620_v39, %v4140_v27  ;;  %v4629_v38 = vadd.f32 %v5766_v54, %v5764_v32 }
 0x354   : > { %v4664_v34 = vpop.f32.mrf.mxu1 }
 0x356   : > { %v4665_v55 = vpop.f32.mrf.mxu1  ;;  %v4686_v59 = vpop.f32.mrf.mxu0 }
 0x357   : > { %v4666_v28 = vadd.f32 %v4665_v55, %v4664_v34 }
 0x358   : > { %v5768_v62 = vpop.f32.mrf.mxu1  ;;  %v4687_v57 = vpop.f32.mrf.mxu0 }
 0x359   : > { %v4688_v0 = vadd.f32 %v4687_v57, %v4686_v59  ;;  %v3474_v59 = vadd.f32 %v4660_v42, %v3409_v18 }
 0x35a   : > { %v5770_v60 = vpop.f32.mrf.mxu1  ;;  %v4689_v1 = vpop.f32.mrf.mxu0 }
 0x35c   : > { %v4726_v2 = vpop.f32.mrf.mxu1  ;;  %v4690_v5 = vpop.f32.mrf.mxu0 }
 0x35d   : > { %v4691_v33 = vadd.f32 %v4690_v5, %v4689_v1  ;;  %v4669_v1 = vadd.f32 %v5770_v60, %v5768_v62 }
 0x35e   : > { %v4727_v40 = vpop.f32.mrf.mxu1  ;;  %v4692_v43 = vpop.f32.mrf.mxu0 }
 0x35f   : > { %v4728_v3 = vadd.f32 %v4727_v40, %v4726_v2  ;;  %v3526_v5 = vadd.f32 %v4691_v33, %v3461_v13 }
 0x360   : > { %v4729_v6 = vpop.f32.mrf.mxu1  ;;  %v4693_v49 = vpop.f32.mrf.mxu0 }
 0x362   : > { %v4730_v7 = vpop.f32.mrf.mxu1  ;;  %v4695_v17 = vpop.f32.mrf.mxu0 }
 0x363   : > { %v4731_v45 = vadd.f32 %v4730_v7, %v4729_v6  ;;  %v3420_v6 = vadd.f32 %v4629_v38, %v4140_v27 }
 0x364   : > { %v4732_v19 = vpop.f32.mrf.mxu1  ;;  %v4696_v8 = vpop.f32.mrf.mxu0 }
 0x365   : > { %v3591_v11 = vadd.f32 %v4731_v45, %v3526_v5 }
 0x366   : > { %v4733_v21 = vpop.f32.mrf.mxu1  ;;  %v5772_v24 = vpop.f32.mrf.mxu0 }
 0x367   : > { %5913 = vst [vmem:[#allocation26_spill] sm:$0xff] %v5772_v24  ;;  %v3466_v24 = vadd.f32 %v4654_v37, %v3401_v53 }
 0x368   : > { %v4735_v63 = vpop.f32.mrf.mxu1  ;;  %v4699_v14 = vpop.f32.mrf.mxu0 }
 0x36a   : > { %v4736_v4 = vpop.f32.mrf.mxu1  ;;  %v5774_v56 = vpop.f32.mrf.mxu0 }
 0x36b   : > { %5914 = vst [vmem:[#allocation27_spill] sm:$0xff] %v5774_v56  ;;  %v4694_v56 = vadd.f32 %v4693_v49, %v4692_v43  ;;  %v4697_v49 = vadd.f32 %v4696_v8, %v4695_v17  ;;  %v4737_v47 = vadd.f32 %v4736_v4, %v4735_v63  ;;  %v5918_v4 = vld [vmem:[#allocation25_spill] sm:$0xff] }
 0x36c   : > { %v5776_v20 = vpop.f32.mrf.mxu1  ;;  %v5781_v35 = vpop.f32.mrf.mxu0 }
 0x36d   : > { %5915 = vst [vmem:[#allocation29_spill] sm:$0xff] %v5776_v20  ;;  %5916 = vst [vmem:[#allocation30_spill] sm:$0xff] %v5781_v35  ;;  %v4623_v20 = vadd.f32 %v4622_v41, %v4621_v36  ;;  %v4734_v35 = vadd.f32 %v4733_v21, %v4732_v19  ;;  %v3531_v43 = vadd.f32 %v4694_v56, %v3466_v24  ;;  %v5919_v56 = vld [vmem:[#allocation28_spill] sm:$0xff] }
 0x36e   : > { %v4739_v22 = vpop.f32.mrf.mxu1  ;;  %v4704_v23 = vpop.f32.mrf.mxu0  ;;  %v3417_v36 = vadd.f32 %v4626_v44, %v4140_v27  ;;  %v3523_v41 = vadd.f32 %v4688_v0, %v3458_v46  ;;  %v3534_v2 = vadd.f32 %v4697_v49, %v3469_v48  ;;  %v5917_v8 = vld [vmem:[#allocation26_spill] sm:$0xff] }
 0x36f   : > { %v3412_v31 = vadd.f32 %v4623_v20, %v4140_v27  ;;  %v3596_v53 = vadd.f32 %v4734_v35, %v3531_v43  ;;  %v4700_v21 = vadd.f32 %v4699_v14, %v5917_v8  ;;  %v4663_v20 = vadd.f32 %v5919_v56, %v5918_v4 }
 0x370   : > { %v5783_v58 = vpop.f32.mrf.mxu1  ;;  %v4705_v51 = vpop.f32.mrf.mxu0  ;;  %v3482_v57 = vadd.f32 %v4666_v28, %v3417_v36  ;;  %v3588_v19 = vadd.f32 %v4728_v3, %v3523_v41  ;;  %v3485_v14 = vadd.f32 %v4669_v1, %v3420_v6 }
 0x371   : > { %v4706_v34 = vadd.f32 %v4705_v51, %v4704_v23  ;;  %v3599_v51 = vadd.f32 %v4737_v47, %v3534_v2  ;;  %v3539_v23 = vadd.f32 %v4700_v21, %v3474_v59 }
 0x372   : > { %v4742_v30 = vpop.f32.mrf.mxu1  ;;  %v4707_v25 = vpop.f32.mrf.mxu0  ;;  %v5921_v61 = vld [vmem:[#allocation27_spill] sm:$0xff] }
 0x373   : > { %v3547_v35 = vadd.f32 %v4706_v34, %v3482_v57  ;;  %v4743_v13 = vadd.f32 %v4742_v30, %v5783_v58 }
 0x374   : > { %v4744_v12 = vpop.f32.mrf.mxu1  ;;  %v4708_v50 = vpop.f32.mrf.mxu0  ;;  %v5920_v7 = vld [vmem:[#allocation29_spill] sm:$0xff]  ;;  %v5922_v26 = vld [vmem:[#allocation30_spill] sm:$0xff] }
 0x375   : > { %v4740_v29 = vadd.f32 %v4739_v22, %v5920_v7  ;;  %v4709_v9 = vadd.f32 %v4708_v50, %v4707_v25  ;;  %v4703_v39 = vadd.f32 %v5922_v26, %v5921_v61  ;;  %v3477_v22 = vadd.f32 %v4663_v20, %v3412_v31  ;;  %v5924_v20 = vld [vmem:[#allocation18_spill] sm:$0xff] }
 0x376   : > { %v4745_v52 = vpop.f32.mrf.mxu1  ;;  %v4820_v55 = vpop.f32.mrf.mxu0 }
 0x377   : > { %v3661_v17 = vadd.f32 %v4820_v55, %v3596_v53  ;;  %v4746_v24 = vadd.f32 %v4745_v52, %v4744_v12  ;;  %v3604_v42 = vadd.f32 %v4740_v29, %v3539_v23  ;;  %v3550_v25 = vadd.f32 %v4709_v9, %v3485_v14  ;;  %v5926_v29 = vld [vmem:[#allocation17_spill] sm:$0xff]  ;;  %v5929_v23 = vld [vmem:[#allocation23_spill] sm:$0xff] }
 0x378   : > { %v4747_v40 = vpop.f32.mrf.mxu1  ;;  %v3652_v63 = vpop.f32.mrf.mxu0  ;;  %v3542_v43 = vadd.f32 %v4703_v39, %v3477_v22  ;;  %v5930_v39 = vld [vmem:[#allocation21_spill] sm:$0xff] }
 0x379   : > { %v4251_v32 = vmul.f32 -1.442695, %v3661_v17  ;;  %v3653_v54 = vadd.f32 %v3652_v63, %v3588_v19  ;;  %v3612_v44 = vadd.f32 %v4746_v24, %v3547_v35  ;;  %v5923_v63 = vld [vmem:[#allocation20_spill] sm:$0xff] }
 0x37a   : > { %v4748_v37 = vpop.f32.mrf.mxu1  ;;  %v4821_v16 = vpop.f32.mrf.mxu0  ;;  %v3607_v41 = vadd.f32 %v4743_v13, %v3542_v43 }
 0x37b   : > { %5146 = vpow2.f32 %v4251_v32  ;;  %v4249_v62 = vmul.f32 -1.442695, %v3653_v54  ;;  %v3664_v60 = vadd.f32 %v4821_v16, %v3599_v51  ;;  %v4749_v0 = vadd.f32 %v4748_v37, %v4747_v40  ;;  %v5925_v51 = vld [vmem:[#allocation19_spill] sm:$0xff]  ;;  %v5927_v16 = vld [vmem:[#allocation24_spill] sm:$0xff] }
 0x37c   : > { %v3655_v10 = vpop.f32.mrf.mxu0 }
 0x37d   : > { %5148 = vpow2.f32 %v4249_v62  ;;  %v4252_v27 = vmul.f32 -1.442695, %v3664_v60  ;;  %v3656_v46 = vadd.f32 %v3655_v10, %v3591_v11  ;;  %v3615_v48 = vadd.f32 %v4749_v0, %v3550_v25  ;;  %v5928_v62 = vld [vmem:[#allocation22_spill] sm:$0xff] }
 0x37e   : > { %v4824_v15 = vpop.f32.mrf.mxu0 }
 0x37f   : > { %5150 = vpow2.f32 %v4252_v27  ;;  %v4250_v28 = vmul.f32 -1.442695, %v3656_v46  ;;  %v3677_v3 = vadd.f32 %v4824_v15, %v3612_v44 }
 0x380   : > { %v3668_v49 = vpop.f32.mrf.mxu0 }
 0x381   : > { %5152 = vpow2.f32 %v4250_v28  ;;  %v4255_v12 = vmul.f32 -1.442695, %v3677_v3  ;;  %v3669_v18 = vadd.f32 %v3668_v49, %v3604_v42 }
 0x382   : > { %v4825_v33 = vpop.f32.mrf.mxu0 }
 0x383   : > { %5154 = vpow2.f32 %v4255_v12  ;;  %v4253_v50 = vmul.f32 -1.442695, %v3669_v18  ;;  %v3680_v36 = vadd.f32 %v4825_v33, %v3615_v48 }
 0x384   : > { %v3671_v31 = vpop.f32.mrf.mxu0 }
 0x385   : > { %5156 = vpow2.f32 %v4253_v50  ;;  %v4256_v58 = vmul.f32 -1.442695, %v3680_v36  ;;  %v3672_v30 = vadd.f32 %v3671_v31, %v3607_v41 }
 0x387   : > { %5158 = vpow2.f32 %v4256_v58  ;;  %v4254_v47 = vmul.f32 -1.442695, %v3672_v30 }
 0x388   : > { %v5147_v52 = vpop.eup %5146 }
 0x389   : > { %v3709_v53 = vadd.f32 1.0, %v5147_v52  ;;  %5160 = vpow2.f32 %v4254_v47 }
 0x38a   : > { %v5149_v59 = vpop.eup %5148 }
 0x38b   : > { %5162 = vrcp.f32 %v3709_v53  ;;  %v3707_v38 = vadd.f32 1.0, %v5149_v59 }
 0x38c   : > { %v5151_v45 = vpop.eup %5150 }
 0x38d   : > { %5164 = vrcp.f32 %v3707_v38  ;;  %v3710_v34 = vadd.f32 1.0, %v5151_v45 }
 0x38e   : > { %v5153_v55 = vpop.eup %5152 }
 0x38f   : > { %5166 = vrcp.f32 %v3710_v34  ;;  %v3708_v57 = vadd.f32 1.0, %v5153_v55 }
 0x390   : > { %v5155_v2 = vpop.eup %5154 }
 0x391   : > { %5168 = vrcp.f32 %v3708_v57  ;;  %v3713_v40 = vadd.f32 1.0, %v5155_v2 }
 0x392   : > { %v5157_v17 = vpop.eup %5156 }
 0x393   : > { %5170 = vrcp.f32 %v3713_v40  ;;  %v3711_v19 = vadd.f32 1.0, %v5157_v17 }
 0x394   : > { %v5159_v1 = vpop.eup %5158 }
 0x395   : > { %5172 = vrcp.f32 %v3711_v19  ;;  %v3714_v5 = vadd.f32 1.0, %v5159_v1 }
 0x396   : > { %v5161_v8 = vpop.eup %5160 }
 0x397   : > { %5174 = vrcp.f32 %v3714_v5  ;;  %v3712_v21 = vadd.f32 1.0, %v5161_v8 }
 0x398   : > { %v5163_v24 = vpop.eup %5162 }
 0x399   : > { %v3733_v4 = vmul.f32 %v5163_v24, %v5923_v63  ;;  %5176 = vrcp.f32 %v3712_v21 }
 0x39a   : > { %v5165_v56 = vpop.eup %5164 }
 0x39b   : > { %3741 = vst [vmem:[%s340_s22 + $0x10] sm:$0xff] %v3733_v4  ;;  %v3731_v32 = vmul.f32 %v5165_v56, %v5924_v20 }
 0x39c   : > { %v5167_v54 = vpop.eup %5166 }
 0x39d   : > { %3739 = vst [vmem:[%s340_s22] sm:$0xff] %v3731_v32  ;;  %v3734_v6 = vmul.f32 %v5167_v54, %v5925_v51 }
 0x39e   : > { %v5169_v7 = vpop.eup %5168 }
 0x39f   : > { %3742 = vst [vmem:[%s340_s22 + $0x18] sm:$0xff] %v3734_v6  ;;  %v3732_v35 = vmul.f32 %v5169_v7, %v5926_v29 }
 0x3a0   : > { %v5171_v37 = vpop.eup %5170 }
 0x3a1   : > { %3740 = vst [vmem:[%s340_s22 + $0x8] sm:$0xff] %v3732_v35  ;;  %v3737_v11 = vmul.f32 %v5171_v37, %v5927_v16 }
 0x3a2   : > { %v5173_v9 = vpop.eup %5172 }
 0x3a3   : > { %3745 = vst [vmem:[%s340_s22 + $0x30] sm:$0xff] %v3737_v11  ;;  %v3735_v60 = vmul.f32 %v5173_v9, %v5928_v62 }
 0x3a4   : > { %v5175_v14 = vpop.eup %5174 }
 0x3a5   : > { %3743 = vst [vmem:[%s340_s22 + $0x20] sm:$0xff] %v3735_v60  ;;  %v3738_v61 = vmul.f32 %v5175_v14, %v5929_v23 }
 0x3a6   : > { %v5177_v26 = vpop.eup %5176 }
 0x3a7   : > { %3746 = vst [vmem:[%s340_s22 + $0x38] sm:$0xff] %v3738_v61  ;;  %v3736_v10 = vmul.f32 %v5177_v26, %v5930_v39 }
 0x3a9   : > { %3744 = vst [vmem:[%s340_s22 + $0x28] sm:$0xff] %v3736_v10 }
 0x3aa   : > { %5297 = shalt.err (!%p5294_p9)
}
 0x3ab   : > { %s5298_s21 = scalar_lea.hbm %s5809_s1, 1024  ;;  %s5302_s14 = scalar_lea.hbm %s5862_s7, 2048 }
 0x3ac   : > { %p5299_p1 = scmp.ne.s32.totalorder %s5809_s1, %s5298_s21  ;;  %p5303_p8 = scmp.lt.s32.totalorder %s5809_s1, %s5862_s7 }
 0x3ad   : > { %p5304_p3 = scmp.lt.s32.totalorder %s5302_s14, %s5298_s21 }
 0x3ae   : > { %p5300_p4 = pnand %p5299_p1, %p5931_p12 }
 0x3af   : > { %p5305_p11 = por %p5304_p3, %p5303_p8 }
 0x3b0   : > { %p5301_p6 = pneg %p5300_p4 }
 0x3b2   : > { %p5306_p7 = pnand %p5305_p11, %p5301_p6 }
 0x3b4   : > { %5309 = shalt.err (!%p5306_p7)
}
 0x3b5   : > { %s5369_s16 = smov 128   ;;  %s5370_s18 = smov 8  }
 0x3b6   : > { %4840 = dma.vmem_to_hbm [thread:$0]  (%p5931_p12), %s5811_s10, 1024, %s5809_s1, %s3748_s28, %s5369_s16, %s5369_s16, %s5370_s18  }
 0x3b7 PF: > { %s3776_s15 = sand.u32 1, %s5344_s24   ;;  %p5932_p13 = scmp.ne.s32.totalorder %s5879_s8, 0 }
 0x3b8   : > { %p5933_p0 = scmp.ge.s32.totalorder %s5356_s27, 2  ;;  %s3777_s19 = scalar_lea.sflag [#allocation6], %s3776_s15 }
 0x3ba   : > { %p4857_p5 = pnand %p5933_p0, %p5932_p13 }
 0x3bc   : > { %p4858_p10 = pneg %p4857_p5 }
 0x3be   : > { %5339 = dma.done.wait (%p4858_p10), %s3777_s19, 1024  }
 0x3bf   : > { %5341 = vsyncadd (%p4858_p10), %s3777_s19, 4294966272  ;;  %p22_p2 = scmp.ge.s32.totalorder %s5486_s13, 4   ;;  %s5934_s24 = smov %s5348_s25 }
 0x3c0   : > { %s5935_s25 = smov %s5352_s26  ;;  %s5936_s26 = smov %s5504_s12 }
 0x3c1   : > { %s5937_s27 = smov %s5486_s13  ;;  %24 = sbr.rel (!%p22_p2) target bundleno = 9 (0x9), region = 107 }
 0x3c6   :  { %3782 = vsyncpa [#allocation5], 1 }
 0x3c7   :  { %3784 = vsyncpa [#allocation5 + $0x1], 1 }
 0x3c8   :  { %3785 = vsyncpa [#allocation8], 1 }
 0x3c9   :  { %3786 = vsyncpa [#allocation11], 1 }
 0x3ca   :  { %3787 = vsyncpa [#allocation6], 1 }
 0x3cb   :  { %3789 = vsyncpa [#allocation6 + $0x1], 1 }

</bundles_post_ra>
